<compile_context>
chip_gen: v7x
topology: tpu7x:2x2x1
jax: 0.10.0
libtpu: 0.0.40
codegen_flags: <defaults>
</compile_context>

<pallas_src>
import functools

import jax
import jax.numpy as jnp
from jax.experimental import pallas as pl
from jax.experimental.pallas import tpu as pltpu

RMS_EPS = 1e-6


def _vmem_capacity_bytes():
    try:
        return int(pltpu.get_tpu_info().vmem_capacity_bytes)
    except Exception:
        return 64 * 1024 * 1024  # conservative fallback (v7x-sized)


_VMEM_BYTES = _vmem_capacity_bytes()
# Leave Mosaic headroom for internal scratch / double buffering:
#   v7x (64 MiB physical)  -> 48 MiB limit
#   v5e/v6e (128 MiB)      -> 96 MiB limit
VMEM_LIMIT = int(_VMEM_BYTES * 3 // 4)
_BIG_VMEM = _VMEM_BYTES >= 100 * 1024 * 1024  # v5e / v6e


def _tile(dim, target):
    """Largest tile <= target that divides dim (falls back to the full dim)."""
    t = min(dim, target)
    while dim % t != 0:
        t //= 2
    return max(t, 1)


def _approx_sigmoid(x):
    # sigmoid via EUP exp + approx reciprocal; clamp avoids exp overflow.
    return pl.reciprocal(1.0 + jnp.exp(-jnp.maximum(x, -30.0)), approx=True)


# -----------------------------------------------------------------------------
# Kernel 1: generic tiled matmul (+ optional SiLU), bf16 in / f32 accumulate.
#   grid = (M/tm, N/tn, K/tk); acc_ref is an f32 VMEM accumulator.
# -----------------------------------------------------------------------------
def _matmul_kernel(x_ref, w_ref, o_ref, acc_ref, *, activation):
    @pl.when(pl.program_id(2) == 0)
    def _():
        acc_ref[...] = jnp.zeros_like(acc_ref)

    acc_ref[...] += jnp.dot(x_ref[...], w_ref[...],
                            preferred_element_type=jnp.float32)

    @pl.when(pl.program_id(2) == pl.num_programs(2) - 1)
    def _():
        y = acc_ref[...]
        if activation == "silu":
            y = y * _approx_sigmoid(y)          # F.silu
        o_ref[...] = y.astype(o_ref.dtype)


def tiled_matmul(x, w, *, activation=None, out_dtype=jnp.bfloat16,
                 tm=None, tn=None, tk=None):
    m, kdim = x.shape
    kdim2, ndim = w.shape
    assert kdim == kdim2
    # bigger tiles on v5e/v6e (128 MiB VMEM), smaller on v7x (64 MiB)
    tm = _tile(m, tm or (512 if _BIG_VMEM else 256))
    tn = _tile(ndim, tn or (1024 if _BIG_VMEM else 512))
    tk = _tile(kdim, tk or 512)
    grid = (m // tm, ndim // tn, kdim // tk)
    return pl.pallas_call(
        functools.partial(_matmul_kernel, activation=activation),
        grid=grid,
        in_specs=[pl.BlockSpec((tm, tk), lambda i, j, k: (i, k)),
                  pl.BlockSpec((tk, tn), lambda i, j, k: (k, j))],
        out_specs=pl.BlockSpec((tm, tn), lambda i, j, k: (i, j)),
        scratch_shapes=[pltpu.VMEM((tm, tn), jnp.float32)],
        out_shape=jax.ShapeDtypeStruct((m, ndim), out_dtype),
        compiler_params=pltpu.CompilerParams(
            dimension_semantics=("parallel", "parallel", "arbitrary"),
            vmem_limit_bytes=VMEM_LIMIT),
    )(x, w)


# -----------------------------------------------------------------------------
# Kernel 2: lightning attention block recurrence (prefill hot path).
#   grid = (B, H/n_pack, n_blocks). n_pack heads are processed per step (two
#   independent MXU chains, wide output stores). The kv state lives in the
#   resident kv output block. Decay tables are precomputed once per forward
#   and DMA'd per head-pair (re-fetched only when the head-pair changes).
# -----------------------------------------------------------------------------
def _lightning_attn_kernel(bdec_ref, qkv_ref, qdec_ref, kdec_ref, ddec_ref,
                           o_ref, kv_ref, *, n_pack, dh):
    hp = pl.program_id(1)
    ti = pl.program_id(2)

    @pl.when(ti == 0)
    def _():
        kv_ref[...] = jnp.zeros_like(kv_ref)

    for p in range(n_pack):                     # static unroll over packed heads
        c0 = p * 3 * dh
        # slice the Ref (not a loaded value): 128-lane-aligned windows
        q = qkv_ref[0, :, c0:c0 + dh]           # (T, dh) bf16
        k = qkv_ref[0, :, c0 + dh:c0 + 2 * dh]
        v = qkv_ref[0, :, c0 + 2 * dh:c0 + 3 * dh]

        kv = kv_ref[0, p]                       # (dh, dh) f32 (resident state)

        # non-diagonal part: (q * q_decay) @ kv
        qd = (q.astype(jnp.float32) * qdec_ref[p]).astype(jnp.bfloat16)
        o_nodiag = jnp.dot(qd, kv.astype(jnp.bfloat16),
                           preferred_element_type=jnp.float32)

        # diagonal part: ((q @ k^T) * diag_decay) @ v  (no materialized transpose)
        qk = jax.lax.dot_general(q, k, (((1,), (1,)), ((), ())),
                                 preferred_element_type=jnp.float32)
        pmat = (qk * ddec_ref[p]).astype(jnp.bfloat16)
        o_diag = jnp.dot(pmat, v, preferred_element_type=jnp.float32)

        o_ref[0, :, p * dh:(p + 1) * dh] = (o_nodiag + o_diag).astype(o_ref.dtype)

        # kv state update: exp(-s*T) * kv + (k * k_decay)^T @ v
        kd = (k.astype(jnp.float32) * kdec_ref[p]).astype(jnp.bfloat16)
        kv_update = jax.lax.dot_general(kd, v, (((0,), (0,)), ((), ())),
                                        preferred_element_type=jnp.float32)
        block_decay = bdec_ref[hp * n_pack + p]
        kv_ref[0, p] = block_decay * kv + kv_update


def lightning_attention_prefill(qkv, slope, num_heads, head_dim, block_t=256):
    """qkv: (B, N, 3*H*Dh) fused activation (per head: [q|k|v] of Dh each).
    Returns y: (B, N, H*Dh)  and final kv state: (B, H, Dh, Dh) f32."""
    b, n, f = qkv.shape
    h, dh = num_heads, head_dim
    assert f == 3 * h * dh
    assert n % block_t == 0, "TODO(synk): ragged final block not handled"
    assert dh % 128 == 0, "TODO(synk): pack heads when head_dim < 128"
    n_blk = n // block_t
    # process 2 heads per grid step when possible (keeps the 256-wide MXU on
    # v6e/v7x busy and halves per-step grid overhead).
    n_pack = 2 if h % 2 == 0 else 1
    h_grp = h // n_pack

    # --- decay tables, computed ONCE per forward (as in the PyTorch code) ---
    s = slope.astype(jnp.float32)
    arr = jnp.arange(1, block_t + 1, dtype=jnp.float32)               # 1..T
    q_decay = jnp.exp(-s[:, None, None] * arr[None, :, None])         # (H,T,1)
    k_decay = jnp.exp(-s[:, None, None] *
                      (block_t - arr)[None, :, None])                 # (H,T,1)
    idx = arr[:, None] - arr[None, :]                                 # (T,T)
    diag_decay = jnp.exp(jnp.where(idx[None] >= 0,
                                   -s[:, None, None] * idx[None],
                                   -jnp.inf))                         # (H,T,T)
    block_decay = jnp.exp(-s * block_t)                               # (H,)

    grid_spec = pltpu.PrefetchScalarGridSpec(
        num_scalar_prefetch=1,
        grid=(b, h_grp, n_blk),
        in_specs=[
            # head-pair hp occupies columns [hp*n_pack*3*dh, (hp+1)*n_pack*3*dh)
            pl.BlockSpec((1, block_t, n_pack * 3 * dh),
                         lambda bi, hp, ti, bd: (bi, ti, hp)),
            pl.BlockSpec((n_pack, block_t, 1),
                         lambda bi, hp, ti, bd: (hp, 0, 0)),           # q_decay
            pl.BlockSpec((n_pack, block_t, 1),
                         lambda bi, hp, ti, bd: (hp, 0, 0)),           # k_decay
            pl.BlockSpec((n_pack, block_t, block_t),
                         lambda bi, hp, ti, bd: (hp, 0, 0)),           # diag_decay
        ],
        out_specs=[
            # write directly into 'b n (h d)' layout -> no XLA transpose
            pl.BlockSpec((1, block_t, n_pack * dh),
                         lambda bi, hp, ti, bd: (bi, ti, hp)),
            # kv state is the resident accumulator across the n_blk axis
            pl.BlockSpec((1, n_pack, dh, dh),
                         lambda bi, hp, ti, bd: (bi, hp, 0, 0)),
        ],
    )
    y, kv = pl.pallas_call(
        functools.partial(_lightning_attn_kernel, n_pack=n_pack, dh=dh),
        grid_spec=grid_spec,
        out_shape=(jax.ShapeDtypeStruct((b, n, h * dh), jnp.bfloat16),
                   jax.ShapeDtypeStruct((b, h, dh, dh), jnp.float32)),
        compiler_params=pltpu.CompilerParams(
            dimension_semantics=("parallel", "parallel", "arbitrary"),
            vmem_limit_bytes=VMEM_LIMIT),
    )(block_decay, qkv, q_decay, k_decay, diag_decay)
    return y, kv


# -----------------------------------------------------------------------------
# Kernel 3a: RMS inverse scale  inv = rsqrt(mean(y^2, -1) + eps), tiled over
#   (M, H*Dh); the (tm,1) output block is the resident accumulator.
# -----------------------------------------------------------------------------
def _rms_inv_kernel(y_ref, o_ref, *, hd_total):
    c = pl.program_id(1)

    @pl.when(c == 0)
    def _():
        o_ref[...] = jnp.zeros_like(o_ref)

    y = y_ref[...].astype(jnp.float32)
    o_ref[...] += jnp.sum(y * y, axis=-1, keepdims=True)

    @pl.when(c == pl.num_programs(1) - 1)
    def _():
        o_ref[...] = jax.lax.rsqrt(o_ref[...] / hd_total + RMS_EPS)


def rms_inv(y, *, tm=None, tc=None):
    m, hd = y.shape
    tm = _tile(m, tm or (512 if _BIG_VMEM else 256))
    tc = _tile(hd, tc or 512)
    grid = (m // tm, hd // tc)
    return pl.pallas_call(
        functools.partial(_rms_inv_kernel, hd_total=float(hd)),
        grid=grid,
        in_specs=[pl.BlockSpec((tm, tc), lambda i, c: (i, c))],
        out_specs=pl.BlockSpec((tm, 1), lambda i, c: (i, 0)),
        out_shape=jax.ShapeDtypeStruct((m, 1), jnp.float32),
        compiler_params=pltpu.CompilerParams(
            dimension_semantics=("parallel", "arbitrary"),
            vmem_limit_bytes=VMEM_LIMIT),
    )(y)


# -----------------------------------------------------------------------------
# Kernel 3b: (y * inv * norm_w) * sigmoid(x @ w_gate), fully tiled over
#   (M, H*Dh, d_model) so no full-width weight panel / f32 accumulator has to
#   stay resident (fits v7x 64 MiB VMEM at production H*Dh).
# -----------------------------------------------------------------------------
def _norm_gate_kernel(y_ref, inv_ref, nw_ref, x_ref, wg_ref, o_ref, acc_ref):
    kk = pl.program_id(2)

    @pl.when(kk == 0)
    def _():
        acc_ref[...] = jnp.zeros_like(acc_ref)

    acc_ref[...] += jnp.dot(x_ref[...], wg_ref[...],
                            preferred_element_type=jnp.float32)

    @pl.when(kk == pl.num_programs(2) - 1)
    def _():
        yn = (y_ref[...].astype(jnp.float32) * inv_ref[...]
              * nw_ref[...].astype(jnp.float32))
        gate = _approx_sigmoid(acc_ref[...])
        o_ref[...] = (gate * yn).astype(o_ref.dtype)


def norm_gate(y, inv, x, norm_w, w_gate, *, tm=None, tn=None, tk=None):
    m, hd = y.shape
    m2, d_model = x.shape
    assert m == m2
    tm = _tile(m, tm or (512 if _BIG_VMEM else 256))
    tn = _tile(hd, tn or 512)
    tk = _tile(d_model, tk or 512)
    grid = (m // tm, hd // tn, d_model // tk)
    return pl.pallas_call(
        _norm_gate_kernel,
        grid=grid,
        in_specs=[
            pl.BlockSpec((tm, tn), lambda i, j, k: (i, j)),   # y (attention out)
            pl.BlockSpec((tm, 1), lambda i, j, k: (i, 0)),    # rms inverse scale
            pl.BlockSpec((1, tn), lambda i, j, k: (0, j)),    # norm weight
            pl.BlockSpec((tm, tk), lambda i, j, k: (i, k)),   # x
            pl.BlockSpec((tk, tn), lambda i, j, k: (k, j)),   # gate weight
        ],
        out_specs=pl.BlockSpec((tm, tn), lambda i, j, k: (i, j)),
        scratch_shapes=[pltpu.VMEM((tm, tn), jnp.float32)],
        out_shape=jax.ShapeDtypeStruct((m, hd), jnp.bfloat16),
        compiler_params=pltpu.CompilerParams(
            dimension_semantics=("parallel", "parallel", "arbitrary"),
            vmem_limit_bytes=VMEM_LIMIT),
    )(y, inv, norm_w.reshape(1, hd), x, w_gate)


# -----------------------------------------------------------------------------
# Full forward of MiniMaxText01LightningAttention.inference (prefill path)
# -----------------------------------------------------------------------------
def minimax_lightning_attention_forward(x, params, slope_rate, block_t=256):
    b, n, d_model = x.shape
    h = params["num_heads"]
    dh = params["head_dim"]

    xf = x.reshape(b * n, d_model).astype(jnp.bfloat16)

    # 1) qkv projection + SiLU (tiled bf16 MXU matmul, f32 accumulation)
    qkv = tiled_matmul(xf, params["w_qkv_t"], activation="silu",
                       out_dtype=jnp.bfloat16)
    qkv = qkv.reshape(b, n, 3 * h * dh)

    # 2) lightning attention block recurrence (2 heads / grid step, decay
    #    tables precomputed once, qkv read via Ref slices, no XLA transposes)
    y, kv_state = lightning_attention_prefill(qkv, slope_rate, h, dh, block_t)
    y = y.reshape(b * n, h * dh)

    # 3) RMSNorm + sigmoid(output_gate(x)) * y   (fully tiled)
    inv = rms_inv(y)
    gated = norm_gate(y, inv, xf, params["norm_w"], params["w_gate_t"])

    # 4) out_proj
    # TODO(synk): fuse the gating epilogue into the out_proj reduction so the
    #             (B*N, H*Dh) gated activation never round-trips HBM.
    out = tiled_matmul(gated, params["w_out_t"], activation=None,
                       out_dtype=x.dtype)

    # TODO(synk): attn_mask masking of v and the decode path
    # (past_key_value is not None) of the PyTorch module are not implemented.
    return out.reshape(b, n, d_model), None, kv_state


# -----------------------------------------------------------------------------
# Pure-JAX f32 reference (direct O(N^2) decayed-causal formulation)
# -----------------------------------------------------------------------------
def reference_forward(x, params, slope_rate):
    b, n, d_model = x.shape
    h = params["num_heads"]
    dh = params["head_dim"]
    w_qkv = params["w_qkv_t"].astype(jnp.float32)
    w_gate = params["w_gate_t"].astype(jnp.float32)
    w_out = params["w_out_t"].astype(jnp.float32)

    y = x.reshape(b * n, d_model) @ w_qkv
    qkv = (y * jax.nn.sigmoid(y)).reshape(b, n, h, 3 * dh)
    q, k, v = jnp.split(qkv, 3, axis=-1)
    q, k, v = (t.transpose(0, 2, 1, 3) for t in (q, k, v))

    i = jnp.arange(n)[:, None].astype(jnp.float32)
    j = jnp.arange(n)[None, :].astype(jnp.float32)
    diff = i - j
    dec = jnp.exp(jnp.where(diff >= 0,
                            -slope_rate[None, :, None, None] * diff,
                            -jnp.inf))
    qk = jnp.einsum("bhnd,bhmd->bhnm", q, k)
    attn = jnp.einsum("bhnm,bhme->bhne", qk * dec, v)

    yy = attn.transpose(0, 2, 1, 3).reshape(b * n, h * dh)
    var = jnp.mean(yy * yy, axis=-1, keepdims=True)
    yn = params["norm_w"][None, :] * (yy * jax.lax.rsqrt(var + RMS_EPS))
    g = jax.nn.sigmoid(x.reshape(b * n, d_model) @ w_gate)
    out = (g * yn) @ w_out
    return out.reshape(b, n, d_model)


def _alibi_slopes(num_heads):
    base = 2.0 ** (-8.0 / num_heads)
    return jnp.array([base ** (i + 1) for i in range(num_heads)], jnp.float32)


if __name__ == "__main__":
    # small shapes consistent with the module: hidden = num_heads * head_dim,
    # head_dim = 128 (lane width), two attention blocks of 256.
    B, N, H, DH = 2, 512, 2, 128
    HIDDEN = H * DH
    BLOCK_T = 256

    key = jax.random.PRNGKey(0)
    k1, k2, k3, k4 = jax.random.split(key, 4)
    x = jax.random.normal(k1, (B, N, HIDDEN), jnp.float32)

    params = {
        "num_heads": H,
        "head_dim": DH,
        "w_qkv_t": (0.05 * jax.random.normal(
            k2, (HIDDEN, 3 * H * DH), jnp.float32)).astype(jnp.bfloat16),
        "w_gate_t": (0.05 * jax.random.normal(
            k3, (HIDDEN, H * DH), jnp.float32)).astype(jnp.bfloat16),
        "w_out_t": (0.05 * jax.random.normal(
            k4, (H * DH, HIDDEN), jnp.float32)).astype(jnp.bfloat16),
        "norm_w": jnp.ones((H * DH,), jnp.float32),
    }
    slope_rate = _alibi_slopes(H)      # per-head decay rates (H,)

    out, _, kv_state = minimax_lightning_attention_forward(
        x, params, slope_rate, block_t=BLOCK_T)
    out = jax.block_until_ready(out)

    ref = reference_forward(x, params, slope_rate)

    assert out.shape == (B, N, HIDDEN)
    assert kv_state.shape == (B, H, DH, DH)
    rel_err = jnp.linalg.norm(out - ref) / jnp.linalg.norm(ref)
    assert float(rel_err) < 2e-2, f"relative error too large: {float(rel_err)}"
    assert jnp.allclose(out, ref, atol=5e-2, rtol=5e-2), "mismatch vs reference"

    print("KERNEL_OK")
</pallas_src>

<mosaic_0001>
module attributes {stable_mosaic.version = 11 : i64} {
  func.func @_matmul_kernel(%arg0: i32, %arg1: i32, %arg2: i32, %arg3: memref<256x256xbf16, #tpu.memory_space<vmem>>, %arg4: memref<256x256xbf16, #tpu.memory_space<vmem>>, %arg5: memref<256x256xbf16, #tpu.memory_space<vmem>>, %arg6: memref<256x256xf32, #tpu.memory_space<vmem>>) attributes {dimension_semantics = [#tpu.dimension_semantics<parallel>, #tpu.dimension_semantics<parallel>, #tpu.dimension_semantics<arbitrary>], iteration_bounds = array<i64: 4, 3, 1>, scalar_prefetch = 0 : i64, scratch_operands = 1 : i64, tpu.core_type = #tpu.core_type<tc>, window_params = [{transform_indices = @transform_0, window_bounds = array<i64: 256, 256>}, {transform_indices = @transform_1, window_bounds = array<i64: 256, 256>}, {transform_indices = @transform_2, window_bounds = array<i64: 256, 256>}]} {
    %c0_i32 = arith.constant 0 : i32
    %0 = arith.cmpi eq, %arg2, %c0_i32 : i32
    %1 = arith.extui %0 : i1 to i32
    %c0_i32_0 = arith.constant 0 : i32
    %2 = arith.cmpi ne, %1, %c0_i32_0 : i32
    scf.if %2 {
      %cst_10 = arith.constant 0.000000e+00 : f32
      %12 = vector.broadcast %cst_10 : f32 to vector<256x256xf32>
      %c0_11 = arith.constant 0 : index
      %c0_12 = arith.constant 0 : index
      %13 = vector.load %arg6[%c0_11, %c0_12] : memref<256x256xf32, #tpu.memory_space<vmem>>, vector<256x256xf32>
      tpu.vector_store %arg6[%c0_11, %c0_12], %12 {strides = array<i32>} : memref<256x256xf32, #tpu.memory_space<vmem>>, vector<256x256xf32>,
    } else {
    }
    %c0 = arith.constant 0 : index
    %c0_1 = arith.constant 0 : index
    %3 = vector.load %arg6[%c0, %c0_1] : memref<256x256xf32, #tpu.memory_space<vmem>>, vector<256x256xf32>
    %c0_2 = arith.constant 0 : index
    %c0_3 = arith.constant 0 : index
    %4 = vector.load %arg3[%c0_2, %c0_3] : memref<256x256xbf16, #tpu.memory_space<vmem>>, vector<256x256xbf16>
    %c0_4 = arith.constant 0 : index
    %c0_5 = arith.constant 0 : index
    %5 = vector.load %arg4[%c0_4, %c0_5] : memref<256x256xbf16, #tpu.memory_space<vmem>>, vector<256x256xbf16>
    %cst = arith.constant dense<0.000000e+00> : vector<256x256xf32>
    %6 = tpu.matmul %4, %5, %cst {dimension_numbers = #tpu.dot_dimension_numbers<[1], [0], [0], [1], [0, 0, 1, 1], [], []>} : vector<256x256xbf16>, vector<256x256xbf16>, vector<256x256xf32> -> vector<256x256xf32>
    %7 = arith.addf %3, %6 : vector<256x256xf32>
    %c0_6 = arith.constant 0 : index
    %c0_7 = arith.constant 0 : index
    %8 = vector.load %arg6[%c0_6, %c0_7] : memref<256x256xf32, #tpu.memory_space<vmem>>, vector<256x256xf32>
    tpu.vector_store %arg6[%c0_6, %c0_7], %7 {strides = array<i32>} : memref<256x256xf32, #tpu.memory_space<vmem>>, vector<256x256xf32>,
    %c0_i32_8 = arith.constant 0 : i32
    %9 = arith.cmpi eq, %arg2, %c0_i32_8 : i32
    %10 = arith.extui %9 : i1 to i32
    %c0_i32_9 = arith.constant 0 : i32
    %11 = arith.cmpi ne, %10, %c0_i32_9 : i32
    scf.if %11 {
      %c0_10 = arith.constant 0 : index
      %c0_11 = arith.constant 0 : index
      %12 = vector.load %arg6[%c0_10, %c0_11] : memref<256x256xf32, #tpu.memory_space<vmem>>, vector<256x256xf32>
      %cst_12 = arith.constant -3.000000e+01 : f32
      %13 = vector.broadcast %cst_12 : f32 to vector<256x256xf32>
      %14 = arith.maximumf %12, %13 : vector<256x256xf32>
      %cst_13 = arith.constant 0.000000e+00 : f32
      %15 = vector.broadcast %cst_13 : f32 to vector<256x256xf32>
      %16 = arith.subf %15, %14 : vector<256x256xf32>
      %17 = math.exp %16 : vector<256x256xf32>
      %cst_14 = arith.constant 1.000000e+00 : f32
      %18 = vector.broadcast %cst_14 : f32 to vector<256x256xf32>
      %19 = arith.addf %18, %17 : vector<256x256xf32>
      %20 = tpu.reciprocal %19 {approx = true} : vector<256x256xf32> -> vector<256x256xf32>
      %21 = arith.mulf %12, %20 : vector<256x256xf32>
      %22 = arith.truncf %21 : vector<256x256xf32> to vector<256x256xbf16>
      %c0_15 = arith.constant 0 : index
      %c0_16 = arith.constant 0 : index
      %23 = vector.load %arg5[%c0_15, %c0_16] : memref<256x256xbf16, #tpu.memory_space<vmem>>, vector<256x256xbf16>
      tpu.vector_store %arg5[%c0_15, %c0_16], %22 {strides = array<i32>} : memref<256x256xbf16, #tpu.memory_space<vmem>>, vector<256x256xbf16>,
    } else {
    }
    return
  }
  func.func @transform_0(%arg0: i32, %arg1: i32, %arg2: i32) -> (i32, i32) {
    %c0_i32 = arith.constant 0 : i32
    return %arg0, %arg2 : i32, i32
  }
  func.func @transform_1(%arg0: i32, %arg1: i32, %arg2: i32) -> (i32, i32) {
    %c0_i32 = arith.constant 0 : i32
    return %arg2, %arg1 : i32, i32
  }
  func.func @transform_2(%arg0: i32, %arg1: i32, %arg2: i32) -> (i32, i32) {
    %c0_i32 = arith.constant 0 : i32
    return %arg0, %arg1 : i32, i32
  }
}

</mosaic_0001>

<bundles_post_ra>
// kernel: tpu_custom_call.1
= control target key start
LH: loop header
LB: loop body
LE: loop exit
PB: predicated region body
PF: predicated region fallthrough
CT: control target
= control target key end

     0   :  { %s3585_s0 = inlined_call_operand.hbm [shape: bf16[1024,256], index: 0, kind: input, shape index: {}]   ;;  %s3586_s1 = inlined_call_operand.hbm [shape: bf16[256,768], index: 1, kind: input, shape index: {}]   ;;  %s3587_s2 = inlined_call_operand.hbm [shape: bf16[1024,768], index: 2, kind: output, shape index: {}]  }
   0x1   :  { %3615 = sst [smem:[#allocation32_spill]] %s3585_s0 }
   0x2   :  { %3616 = sst [smem:[#allocation33_spill]] %s3587_s2 }
   0x3   :  { %7 = vsyncpa [#allocation4], 0 }
   0x4   :  { %9 = vsyncpa [#allocation4 + $0x1], 0 }
   0x5   :  { %10 = vsyncpa [#allocation7], 0 }
   0x6   :  { %12 = vsyncpa [#allocation7 + $0x1], 0 }
   0x7   :  { %13 = vsyncpa [#allocation5], 0 }
   0x8   :  { %15 = vsyncpa [#allocation5 + $0x1], 0  ;;  %s2862_s9 = smov 0   ;;  %s2864_s10 = smov 0  }
   0x9   :  { %s2866_s11 = smov 0   ;;  %s2868_s12 = smov 0  }
   0xa   :  { %s2870_s13 = smov 0   ;;  %s2872_s14 = smov 0  }
   0xb   :  { %s2874_s15 = smov 0   ;;  %s2876_s16 = smov 0  }
   0xc   :  { %s2878_s17 = smov 0   ;;  %s2880_s18 = smov 0  }
   0xd   :  { %s2882_s19 = smov 0   ;;  %s2884_s20 = smov 0  }
   0xe   :  { %s2886_s21 = smov 0   ;;  %s2888_s22 = smov 0  }
   0xf LB: > { %3617 = sst [smem:[#allocation12_spill]] %s2820_s18  ;;  %s1951_s23 = sadd.s32 4294967295, %s2836_s22   ;;  %s2836_s22 = sphi %s2888_s22, %s21_s22   ;;  %s2832_s21 = sphi %s2886_s21, %s3679_s21   ;;  %s2828_s20 = sphi %s2884_s20, %s3690_s20   ;;  %s2824_s19 = sphi %s2882_s19, %s3677_s19   ;;  %s2820_s18 = sphi %s2880_s18, %s3689_s18   ;;  %s2816_s17 = sphi %s2878_s17, %s3688_s17   ;;  %s2812_s16 = sphi %s2876_s16, %s3687_s16   ;;  %s2808_s15 = sphi %s2874_s15, %s3686_s15   ;;  %s2804_s14 = sphi %s2872_s14, %s3685_s14   ;;  %s2800_s13 = sphi %s2870_s13, %s3684_s13   ;;  %s2796_s12 = sphi %s2868_s12, %s3683_s12   ;;  %s2792_s11 = sphi %s2866_s11, %s3682_s11   ;;  %s2788_s10 = sphi %s2864_s10, %s3681_s10   ;;  %s2784_s9 = sphi %s2862_s9, %s3680_s9  }
  0x10   : > { %3618 = sst [smem:[#allocation13_spill]] %s2832_s21  ;;  %s40_s24 = sadd.s32 1, %s2832_s21 }
  0x11   : > { %p56_p0 = scmp.ne.s32.totalorder %s2816_s17, %s2812_s16  ;;  %p3589_p1 = scmp.eq.s32.totalorder %s2836_s22, 0 }
  0x12   : > { %p62_p2 = scmp.ne.s32.totalorder %s2812_s16, %s2808_s15  ;;  %p2937_p3 = scmp.eq.s32.totalorder %s1951_s23, 0 }
  0x13   : > { %p2941_p4 = scmp.eq.s32.totalorder %s1951_s23, 11  ;;  %p58_p5 = por %p3589_p1, %p56_p0 }
  0x14   : > { %p2949_p6 = por %p2937_p3, %p62_p2  ;;  %p3588_p7 = scmp.lt.s32.totalorder %s2836_s22, 12 }
  0x15   : > { %s3620_s27 = scalar_select %p2941_p4, 1, 0 }
  0x16   : > { %s3621_s28 = scalar_select %p2949_p6, 1, 0 }
  0x17   : > { %s142_s29 = sand.u32 1, %s2816_s17   ;;  %s2070_s30 = sshll.u32 %s2832_s21, 12 }
  0x18   : > { %s1955_s3 = sshll.u32 %s142_s29, 8  ;;  %s3622_s0 = sld [smem:[#allocation32_spill]] }
  0x19   : > { %s146_s7 = scalar_lea.vmem [#allocation3], %s1955_s3  ;;  %p2963_p8 = pnand %p3588_p7, %p58_p5 }
  0x1a   : > { %s156_s8 = sshll.u32 %s146_s7, 4  ;;  %s2969_s23 = scalar_lea.sflag [#allocation4], %s142_s29  ;;  %s2967_s8 = int_to_ptr.vmem [resolvable:$true] %s156_s8 }
  0x1b   : > { %p2628_p10 = pneg %p2963_p8 }
  0x1e   : > { %s2959_s6 = scalar_lea.hbm %s3622_s0, %s2070_s30  ;;  %s2631_s5 = scalar_lea.hbm %s3622_s0, 16384 }
  0x1f   : > { %s2626_s4 = scalar_lea.hbm %s2959_s6, 4096  ;;  %p2632_p13 = scmp.lt.u32.totalorder %s2959_s6, %s3622_s0 }
  0x20   : > { %p2627_p9 = scmp.ne.s32.totalorder %s2959_s6, %s2626_s4  ;;  %p2633_p0 = scmp.lt.u32.totalorder %s2631_s5, %s2626_s4 }
  0x21   : > { %p2635_p5 = scmp.lt.u32.totalorder %s2626_s4, %s2959_s6 }
  0x22   : > { %p2629_p11 = pnand %p2628_p10, %p2627_p9  ;;  %p2634_p2 = por %p2633_p0, %p2632_p13 }
  0x24   : > { %p2630_p12 = pneg %p2629_p11  ;;  %p2636_p7 = por %p2635_p5, %p2634_p2 }
  0x26   : > { %p2637_p1 = pnand %p2636_p7, %p2630_p12 }
  0x28   : > { %2640 = shalt.err (!%p2637_p1)
}
  0x29   : > { %s2641_s29 = scalar_lea.vmem %s2967_s8, 4096  ;;  %s2838_s30 = smov [#allocation3]  }
  0x2a   : > { %p2642_p9 = scmp.ne.s32.totalorder %s2967_s8, %s2641_s29  ;;  %s2646_s3 = sshll.u32 %s2838_s30, 4  ;;  %s2647_s3 = int_to_ptr.vmem [resolvable:$false] %s2646_s3 }
  0x2b   : > { %s2648_s25 = scalar_lea.vmem %s2647_s3, 8192  ;;  %p2649_p4 = scmp.lt.s32.totalorder %s2967_s8, %s2647_s3 }
  0x2c   : > { %p2644_p11 = pnand %p2642_p9, %p2628_p10  ;;  %p2650_p13 = scmp.lt.s32.totalorder %s2648_s25, %s2641_s29 }
  0x2e   : > { %p2645_p6 = pneg %p2644_p11  ;;  %p2651_p0 = por %p2650_p13, %p2649_p4 }
  0x30   : > { %p2652_p2 = pnand %p2651_p0, %p2645_p6 }
  0x32   : > { %2655 = shalt.err (!%p2652_p2)
}
  0x33   : > { %s3591_s4 = smov 128   ;;  %s3592_s5 = smov 8  }
  0x34   : > { %2146 = dma.hbm_to_vmem [thread:$0]  (!%p2963_p8), %s2959_s6, 4096, %s2967_s8, %s2969_s23, %s3591_s4, %s3591_s4, %s3592_s5  }
  0x35   : > { %p1962_p1 = scmp.ge.s32.totalorder %s2836_s22, 1  ;;  %p188_p4 = scmp.lt.s32.totalorder %s2836_s22, 13 }
  0x36   : > { %s1952_s29 = sadd.s32 4294967294, %s2836_s22   ;;  %s36_s30 = sadd.s32 1, %s2828_s20 }
  0x37   : > { %p3002_p6 = pnand %p1962_p1, %p188_p4  ;;  %s77_s3 = sadd.s32 1, %s2804_s14 }
  0x38   : > { %p38_p7 = scmp.ge.s32.totalorder %s36_s30, 3  ;;  %p84_p10 = scmp.ne.s32.totalorder %s2804_s14, %s2800_s13 }
  0x39   : > { %p90_p12 = scmp.ne.s32.totalorder %s2800_s13, %s2796_s12  ;;  %s105_s15 = sadd.s32 1, %s2792_s11 }
  0x3a   : > { %s3692_s30 = smov (%p38_p7, %s36_s30), 0  ;;  %s3694_s24 = smov (!%p38_p7, %s40_s24), %s2832_s21 }
  0x3b   : > { %3625 = sst [smem:[#allocation14_spill]] %s3692_s30  ;;  %s73_s6 = ssub.s32 %s2828_s20, %s3692_s30 }
  0x3c   : > { %p3626_p8 = scmp.eq.s32.totalorder %s2836_s22, 0  ;;  %p42_p9 = scmp.ge.s32.totalorder %s3694_s24, 4 }
  0x3d   : > { %p75_p11 = scmp.eq.s32.totalorder %s73_s6, 0  ;;  %p3029_p13 = por %p90_p12, %p2937_p3 }
  0x3e   : > { %p3023_p5 = por %p84_p10, %p3626_p8  ;;  %p115_p0 = scmp.ne.s32.totalorder %s2792_s11, %s2788_s10 }
  0x3f   : > { %s3628_s12 = scalar_select %p3029_p13, 1, 0 }
  0x40   : > { %s3696_s24 = smov (%p42_p9, %s3694_s24), 0  ;;  %p3631_p2 = scmp.ne.s32.totalorder %s3620_s27, 0 }
  0x41   : > { %3629 = sst [smem:[#allocation15_spill]] %s3696_s24  ;;  %s44_s25 = ssub.s32 %s2832_s21, %s3696_s24 }
  0x42   : > { %s3038_s23 = scalar_select %p75_p11, %s2804_s14, %s77_s3  }
  0x43   : > { %p3044_p1 = por %p3631_p2, %p115_p0  ;;  %p47_p4 = scmp.eq.s32.totalorder %s44_s25, 0 }
  0x44   : > { %3630 = sst [smem:[#allocation16_spill]] %s3038_s23  ;;  %s102_s26 = sor.u32 %s73_s6, %s44_s25 }
  0x45   : > { %s3632_s4 = scalar_select %p3044_p1, 1, 0 }
  0x46   : > { %p103_p3 = scmp.eq.s32.totalorder %s102_s26, 0  ;;  %p121_p7 = scmp.ne.s32.totalorder %s2788_s10, %s2784_s9 }
  0x47   : > { %3633 = sst [smem:[#allocation17_spill]] %s3632_s4  ;;  %s3634_s5 = sadd.s32 1, %s2816_s17 }
  0x48   : > { %s3053_s0 = scalar_select %p47_p4, %s2816_s17, %s3634_s5  }
  0x49   : > { %s3056_s30 = scalar_select %p103_p3, %s2792_s11, %s105_s15  }
  0x4a   : > { %p122_p10 = scmp.eq.s32.totalorder %s1952_s29, 11  ;;  %s166_s3 = sand.u32 1, %s2804_s14  }
  0x4b   : > { %s1959_s23 = sshll.u32 %s166_s3, 8  ;;  %s2071_s24 = sshll.u32 %s2828_s20, 7 }
  0x4c   : > { %p3059_p12 = por %p122_p10, %p121_p7  ;;  %s170_s21 = scalar_lea.vmem [#allocation6], %s1959_s23 }
  0x4d   : > { %s180_s2 = sshll.u32 %s170_s21, 4  ;;  %s3067_s6 = scalar_lea.hbm %s3586_s1, %s2071_s24  ;;  %s3069_s2 = int_to_ptr.vmem [resolvable:$true] %s180_s2 }
  0x4e   : > { %s3635_s27 = scalar_select %p3059_p12, 1, 0 }
  0x4f   : > { %p3636_p8 = scmp.lt.s32.totalorder %s2836_s22, 12  ;;  %s3079_s21 = scalar_lea.sflag [#allocation7], %s166_s3 }
  0x50   : > { %s2656_s29 = scalar_lea.hbm %s3067_s6, 4096  ;;  %s2661_s4 = scalar_lea.hbm %s3586_s1, 12288 }
  0x51   : > { %p3075_p9 = pnand %p3636_p8, %p3023_p5  ;;  %p2657_p11 = scmp.ne.s32.totalorder %s3067_s6, %s2656_s29 }
  0x52   : > { %p2662_p5 = scmp.lt.u32.totalorder %s3067_s6, %s3586_s1  ;;  %p2663_p3 = scmp.lt.u32.totalorder %s2661_s4, %s2656_s29 }
  0x53   : > { %p2658_p0 = pneg %p3075_p9  ;;  %p2665_p10 = scmp.lt.u32.totalorder %s2656_s29, %s3067_s6 }
  0x54   : > { %p2664_p7 = por %p2663_p3, %p2662_p5 }
  0x55   : > { %p2659_p2 = pnand %p2658_p0, %p2657_p11 }
  0x56   : > { %p2666_p8 = por %p2665_p10, %p2664_p7 }
  0x57   : > { %p2660_p4 = pneg %p2659_p2 }
  0x59   : > { %p2667_p12 = pnand %p2666_p8, %p2660_p4 }
  0x5b   : > { %2670 = shalt.err (!%p2667_p12)
}
  0x5c   : > { %s2671_s23 = scalar_lea.vmem %s3069_s2, 4096  ;;  %s2841_s25 = smov [#allocation6]  }
  0x5d   : > { %p2672_p11 = scmp.ne.s32.totalorder %s3069_s2, %s2671_s23  ;;  %s2676_s26 = sshll.u32 %s2841_s25, 4  ;;  %s2677_s26 = int_to_ptr.vmem [resolvable:$false] %s2676_s26 }
  0x5e   : > { %s2678_s3 = scalar_lea.vmem %s2677_s26, 8192  ;;  %p2679_p13 = scmp.lt.s32.totalorder %s3069_s2, %s2677_s26 }
  0x5f   : > { %p2674_p2 = pnand %p2672_p11, %p2658_p0  ;;  %p2680_p5 = scmp.lt.s32.totalorder %s2678_s3, %s2671_s23 }
  0x61   : > { %p2675_p1 = pneg %p2674_p2  ;;  %p2681_p3 = por %p2680_p5, %p2679_p13 }
  0x63   : > { %p2682_p7 = pnand %p2681_p3, %p2675_p1 }
  0x65   : > { %2685 = shalt.err (!%p2682_p7)
}
  0x66   : > { %s2842_s29 = smov 384   ;;  %s3638_s18 = smov 8  }
  0x67   : > { %s3639_s24 = smov 128   ;;  %192 = sbr.rel (%p3002_p6) target bundleno = 563 (0x233), region = 28 }
  0x68   : > { %2149 = dma.hbm_to_vmem [thread:$0]  (!%p3075_p9), %s3067_s6, 4096, %s3069_s2, %s3079_s21, %s2842_s29, %s3639_s24, %s3638_s18  }
  0x6e   : > { %s194_s4 = sand.u32 1, %s2812_s16   ;;  %p3640_p13 = scmp.ne.s32.totalorder %s3621_s28, 0 }
  0x6f   : > { %s1963_s15 = sshll.u32 %s194_s4, 8  ;;  %s195_s8 = scalar_lea.sflag [#allocation4], %s194_s4 }
  0x70   : > { %s3112_s23 = scalar_lea.vmem [#allocation3], %s1963_s15 }
  0x71   : > { %2771 = dma.done.wait (%p3640_p13), %s195_s8, 4096  }
  0x72   : > { %2773 = vsyncadd (%p3640_p13), %s195_s8, 4294963200  ;;  %s203_s5 = sand.u32 1, %s2800_s13   ;;  %p3641_p6 = scmp.ne.s32.totalorder %s3628_s12, 0 }
  0x73   : > { %s1964_s25 = sshll.u32 %s203_s5, 8  ;;  %s204_s2 = scalar_lea.sflag [#allocation7], %s203_s5 }
  0x74   : > { %s3119_s6 = scalar_lea.vmem [#allocation6], %s1964_s25 }
  0x75   : > { %2775 = dma.done.wait (%p3641_p6), %s204_s2, 4096  }
  0x76   : > { %2777 = vsyncadd (%p3641_p6), %s204_s2, 4294963200  ;;  %v2274_v0 = vld [vmem:[%s3119_s6 + $0x4] ss:$8 sps:$4 sm:$0xff]   ;;  %v2276_v1 = vld [vmem:[%s3119_s6] ss:$8 sps:$4 sm:$0xff]   ;;  %s230_s28 = sand.u32 1, %s2788_s10  }
  0x77   : > { %755 = vmatprep.subr.bf16.mxu0 %v2274_v0  ;;  %2104 = vmatprep.subr.bf16.mxu1 %v2274_v0  ;;  %v2277_v2 = vld [vmem:[%s3119_s6 + $0x14] ss:$8 sps:$4 sm:$0xff]   ;;  %v2279_v3 = vld [vmem:[%s3119_s6 + $0x10] ss:$8 sps:$4 sm:$0xff]   ;;  %v2280_v4 = vld [vmem:[%s3119_s6 + $0x24] ss:$8 sps:$4 sm:$0xff]  }
  0x78   : > { %756 = vmatpush1.bf16.msra.mxu0 %v2276_v1  ;;  %2120 = vmatpush1.bf16.msra.mxu1 %v2276_v1  ;;  %v2282_v5 = vld [vmem:[%s3119_s6 + $0x20] ss:$8 sps:$4 sm:$0xff]   ;;  %v2283_v6 = vld [vmem:[%s3119_s6 + $0x34] ss:$8 sps:$4 sm:$0xff]   ;;  %v2285_v7 = vld [vmem:[%s3119_s6 + $0x30] ss:$8 sps:$4 sm:$0xff]  }
  0x79   : > { %757 = vmatprep.subr.bf16.mxu0 %v2277_v2  ;;  %2105 = vmatprep.subr.bf16.mxu1 %v2277_v2  ;;  %v2286_v8 = vld [vmem:[%s3119_s6 + $0x44] ss:$8 sps:$4 sm:$0xff]   ;;  %v2288_v9 = vld [vmem:[%s3119_s6 + $0x40] ss:$8 sps:$4 sm:$0xff]   ;;  %v2289_v10 = vld [vmem:[%s3119_s6 + $0x54] ss:$8 sps:$4 sm:$0xff]  }
  0x7a   : > { %v2291_v11 = vld [vmem:[%s3119_s6 + $0x50] ss:$8 sps:$4 sm:$0xff]   ;;  %v2292_v12 = vld [vmem:[%s3119_s6 + $0x64] ss:$8 sps:$4 sm:$0xff]   ;;  %v2294_v14 = vld [vmem:[%s3119_s6 + $0x60] ss:$8 sps:$4 sm:$0xff]  }
  0x7b   : > { %v2324_v13 = vld [vmem:[%s3112_s23 + $0x4] ss:$8 sps:$4 sm:$0xff]   ;;  %v2295_v16 = vld [vmem:[%s3119_s6 + $0x74] ss:$8 sps:$4 sm:$0xff]   ;;  %v2297_v17 = vld [vmem:[%s3119_s6 + $0x70] ss:$8 sps:$4 sm:$0xff]  }
  0x7c   : > { %758 = vmatpush1.bf16.msra.mxu0 %v2279_v3  ;;  %2121 = vmatpush1.bf16.msra.mxu1 %v2279_v3  ;;  %v2327_v15 = vld [vmem:[%s3112_s23 + $0x84] ss:$8 sps:$4 sm:$0xff]   ;;  %v2300_v19 = vld [vmem:[%s3119_s6 + $0x80] ss:$8 sps:$4 sm:$0xff]   ;;  %v2301_v20 = vld [vmem:[%s3119_s6 + $0x94] ss:$8 sps:$4 sm:$0xff]  }
  0x7d   : > { %759 = vmatprep.subr.bf16.mxu0 %v2280_v4  ;;  %2106 = vmatprep.subr.bf16.mxu1 %v2280_v4  ;;  %v2298_v18 = vld [vmem:[%s3119_s6 + $0x84] ss:$8 sps:$4 sm:$0xff]   ;;  %v2303_v21 = vld [vmem:[%s3119_s6 + $0x90] ss:$8 sps:$4 sm:$0xff]   ;;  %v2306_v23 = vld [vmem:[%s3119_s6 + $0xa0] ss:$8 sps:$4 sm:$0xff]  }
  0x7e   : > { %787 = vmatprep.mubr.bf16.mxu0 %v2324_v13  ;;  %867 = vmatprep.mubr.bf16.mxu1 %v2327_v15  ;;  %v2304_v22 = vld [vmem:[%s3119_s6 + $0xa4] ss:$8 sps:$4 sm:$0xff]   ;;  %v2307_v24 = vld [vmem:[%s3119_s6 + $0xb4] ss:$8 sps:$4 sm:$0xff]   ;;  %v2309_v25 = vld [vmem:[%s3119_s6 + $0xb0] ss:$8 sps:$4 sm:$0xff]  }
  0x7f   : > { %v2310_v26 = vld [vmem:[%s3119_s6 + $0xc4] ss:$8 sps:$4 sm:$0xff]   ;;  %v2312_v27 = vld [vmem:[%s3119_s6 + $0xc0] ss:$8 sps:$4 sm:$0xff]   ;;  %v2313_v28 = vld [vmem:[%s3119_s6 + $0xd4] ss:$8 sps:$4 sm:$0xff]  }
  0x80   : > { %760 = vmatpush1.bf16.msra.mxu0 %v2282_v5  ;;  %2122 = vmatpush1.bf16.msra.mxu1 %v2282_v5  ;;  %v2315_v29 = vld [vmem:[%s3119_s6 + $0xd0] ss:$8 sps:$4 sm:$0xff]   ;;  %v2316_v30 = vld [vmem:[%s3119_s6 + $0xe4] ss:$8 sps:$4 sm:$0xff]   ;;  %v2318_v31 = vld [vmem:[%s3119_s6 + $0xe0] ss:$8 sps:$4 sm:$0xff]  }
  0x81   : > { %761 = vmatprep.subr.bf16.mxu0 %v2283_v6  ;;  %2107 = vmatprep.subr.bf16.mxu1 %v2283_v6  ;;  %v2319_v32 = vld [vmem:[%s3119_s6 + $0xf4] ss:$8 sps:$4 sm:$0xff]   ;;  %v2321_v33 = vld [vmem:[%s3119_s6 + $0xf0] ss:$8 sps:$4 sm:$0xff]   ;;  %v2322_v34 = vld [vmem:[%s3112_s23] ss:$8 sps:$4 sm:$0xff]  }
  0x82   : > { %v2325_v35 = vld [vmem:[%s3112_s23 + $0x80] ss:$8 sps:$4 sm:$0xff]   ;;  %v2328_v36 = vld [vmem:[%s3112_s23 + $0x14] ss:$8 sps:$4 sm:$0xff]   ;;  %v2332_v38 = vld [vmem:[%s3112_s23 + $0x10] ss:$8 sps:$4 sm:$0xff]  }
  0x83   : > { %v2330_v37 = vld [vmem:[%s3112_s23 + $0x94] ss:$8 sps:$4 sm:$0xff]   ;;  %v2333_v39 = vld [vmem:[%s3112_s23 + $0x90] ss:$8 sps:$4 sm:$0xff]   ;;  %v2334_v40 = vld [vmem:[%s3112_s23 + $0x24] ss:$8 sps:$4 sm:$0xff]  }
  0x84   : > { %762 = vmatpush1.bf16.msra.mxu0 %v2285_v7  ;;  %2123 = vmatpush1.bf16.msra.mxu1 %v2285_v7  ;;  %v2336_v41 = vld [vmem:[%s3112_s23 + $0xa4] ss:$8 sps:$4 sm:$0xff]   ;;  %v2338_v42 = vld [vmem:[%s3112_s23 + $0x20] ss:$8 sps:$4 sm:$0xff]   ;;  %v2340_v44 = vld [vmem:[%s3112_s23 + $0x34] ss:$8 sps:$4 sm:$0xff]  }
  0x85   : > { %763 = vmatprep.subr.bf16.mxu0 %v2286_v8  ;;  %2108 = vmatprep.subr.bf16.mxu1 %v2286_v8  ;;  %v2339_v43 = vld [vmem:[%s3112_s23 + $0xa0] ss:$8 sps:$4 sm:$0xff]   ;;  %v2342_v45 = vld [vmem:[%s3112_s23 + $0xb4] ss:$8 sps:$4 sm:$0xff]   ;;  %v2344_v46 = vld [vmem:[%s3112_s23 + $0x30] ss:$8 sps:$4 sm:$0xff]  }
  0x86   : > { %v2345_v47 = vld [vmem:[%s3112_s23 + $0xb0] ss:$8 sps:$4 sm:$0xff]   ;;  %v2346_v48 = vld [vmem:[%s3112_s23 + $0x44] ss:$8 sps:$4 sm:$0xff]   ;;  %v2350_v50 = vld [vmem:[%s3112_s23 + $0x40] ss:$8 sps:$4 sm:$0xff]  }
  0x87   : > { %v2348_v49 = vld [vmem:[%s3112_s23 + $0xc4] ss:$8 sps:$4 sm:$0xff]   ;;  %v2351_v51 = vld [vmem:[%s3112_s23 + $0xc0] ss:$8 sps:$4 sm:$0xff]   ;;  %v2352_v52 = vld [vmem:[%s3112_s23 + $0x54] ss:$8 sps:$4 sm:$0xff]  }
  0x88   : > { %764 = vmatpush1.bf16.msra.mxu0 %v2288_v9  ;;  %2124 = vmatpush1.bf16.msra.mxu1 %v2288_v9  ;;  %v2354_v53 = vld [vmem:[%s3112_s23 + $0xd4] ss:$8 sps:$4 sm:$0xff]   ;;  %v2356_v54 = vld [vmem:[%s3112_s23 + $0x50] ss:$8 sps:$4 sm:$0xff]   ;;  %v2358_v56 = vld [vmem:[%s3112_s23 + $0x64] ss:$8 sps:$4 sm:$0xff]  }
  0x89   : > { %765 = vmatprep.subr.bf16.mxu0 %v2289_v10  ;;  %2109 = vmatprep.subr.bf16.mxu1 %v2289_v10  ;;  %v2357_v55 = vld [vmem:[%s3112_s23 + $0xd0] ss:$8 sps:$4 sm:$0xff]   ;;  %v2360_v57 = vld [vmem:[%s3112_s23 + $0xe4] ss:$8 sps:$4 sm:$0xff]   ;;  %v2362_v58 = vld [vmem:[%s3112_s23 + $0x60] ss:$8 sps:$4 sm:$0xff]  }
  0x8a   : > { %v2363_v59 = vld [vmem:[%s3112_s23 + $0xe0] ss:$8 sps:$4 sm:$0xff]   ;;  %v2364_v60 = vld [vmem:[%s3112_s23 + $0x74] ss:$8 sps:$4 sm:$0xff]   ;;  %v2368_v62 = vld [vmem:[%s3112_s23 + $0x70] ss:$8 sps:$4 sm:$0xff]  }
  0x8b   : > { %v2366_v61 = vld [vmem:[%s3112_s23 + $0xf4] ss:$8 sps:$4 sm:$0xff]   ;;  %v2369_v63 = vld [vmem:[%s3112_s23 + $0xf0] ss:$8 sps:$4 sm:$0xff]   ;;  %s3280_s7 = sshll.u32 %s230_s28, 8  ;;  %s3670_s21 = sld [smem:[#allocation12_spill]] }
  0x8c   : > { %766 = vmatpush1.bf16.msra.mxu0 %v2291_v11  ;;  %2125 = vmatpush1.bf16.msra.mxu1 %v2291_v11  ;;  %s3307_s12 = scalar_lea.vmem [#allocation8], %s3280_s7  ;;  %s2136_s26 = smul.u32 192, %s2824_s19 }
  0x8d   : > { %767 = vmatprep.subr.bf16.mxu0 %v2292_v12  ;;  %2110 = vmatprep.subr.bf16.mxu1 %v2292_v12  ;;  %s1832_s29 = sshll.u32 %s3307_s12, 4  ;;  %s3671_s18 = sld [smem:[#allocation17_spill]]  ;;  %s3498_s29 = int_to_ptr.vmem [resolvable:$true] %s1832_s29 }
  0x8e   : > { %s3672_s8 = sld [smem:[#allocation33_spill]]  ;;  %s3509_s5 = scalar_lea.sflag [#allocation5], %s230_s28 }
  0x8f   : > { %s2686_s25 = scalar_lea.vmem %s3498_s29, 4096  ;;  %s2843_s2 = smov [#allocation8]  }
  0x90   : > { %768 = vmatpush1.bf16.msra.mxu0 %v2294_v14  ;;  %2126 = vmatpush1.bf16.msra.mxu1 %v2294_v14  ;;  %p2687_p1 = scmp.ne.s32.totalorder %s3498_s29, %s2686_s25  ;;  %s2690_s6 = sshll.u32 %s2843_s2, 4  ;;  %s2691_s6 = int_to_ptr.vmem [resolvable:$false] %s2690_s6 }
  0x91   : > { %769 = vmatprep.subr.bf16.mxu0 %v2295_v16  ;;  %2111 = vmatprep.subr.bf16.mxu1 %v2295_v16  ;;  %s2064_s3 = sshll.u32 %s3670_s21, 1  ;;  %s2692_s7 = scalar_lea.vmem %s2691_s6, 8192 }
  0x92   : > { %s1829_s19 = sadd.s32 %s2136_s26, %s2064_s3  ;;  %p2693_p4 = scmp.lt.s32.totalorder %s3498_s29, %s2691_s6 }
  0x93   : > { %s2066_s24 = sshll.u32 %s1829_s19, 6  ;;  %p3673_p12 = scmp.ne.s32.totalorder %s3671_s18, 0 }
  0x94   : > { %770 = vmatpush1.bf16.msra.mxu0 %v2297_v17  ;;  %2127 = vmatpush1.bf16.msra.mxu1 %v2297_v17  ;;  %s3503_s23 = scalar_lea.hbm %s3672_s8, %s2066_s24  ;;  %p2694_p10 = scmp.lt.s32.totalorder %s2692_s7, %s2686_s25 }
  0x95   : > { %771 = vmatprep.subr.bf16.mxu0 %v2298_v18  ;;  %2112 = vmatprep.subr.bf16.mxu1 %v2298_v18  ;;  %p2688_p9 = pnand %p2687_p1, %p3673_p12 }
  0x96   : > { %p2695_p8 = por %p2694_p10, %p2693_p4 }
  0x97   : > { %p2689_p0 = pneg %p2688_p9 }
  0x98   : > { %772 = vmatpush1.bf16.msra.mxu0 %v2300_v19  ;;  %2128 = vmatpush1.bf16.msra.mxu1 %v2300_v19 }
  0x99   : > { %773 = vmatprep.subr.bf16.mxu0 %v2301_v20  ;;  %2113 = vmatprep.subr.bf16.mxu1 %v2301_v20  ;;  %p2696_p11 = pnand %p2695_p8, %p2689_p0 }
  0x9c   : > { %774 = vmatpush1.bf16.msra.mxu0 %v2303_v21  ;;  %2129 = vmatpush1.bf16.msra.mxu1 %v2303_v21 }
  0x9d   : > { %775 = vmatprep.subr.bf16.mxu0 %v2304_v22  ;;  %2114 = vmatprep.subr.bf16.mxu1 %v2304_v22 }
  0xa0   : > { %776 = vmatpush1.bf16.msra.mxu0 %v2306_v23  ;;  %2130 = vmatpush1.bf16.msra.mxu1 %v2306_v23 }
  0xa1   : > { %777 = vmatprep.subr.bf16.mxu0 %v2307_v24  ;;  %2115 = vmatprep.subr.bf16.mxu1 %v2307_v24 }
  0xa4   : > { %778 = vmatpush1.bf16.msra.mxu0 %v2309_v25  ;;  %2131 = vmatpush1.bf16.msra.mxu1 %v2309_v25 }
  0xa5   : > { %779 = vmatprep.subr.bf16.mxu0 %v2310_v26  ;;  %2116 = vmatprep.subr.bf16.mxu1 %v2310_v26 }
  0xa8   : > { %780 = vmatpush1.bf16.msra.mxu0 %v2312_v27  ;;  %2132 = vmatpush1.bf16.msra.mxu1 %v2312_v27 }
  0xa9   : > { %781 = vmatprep.subr.bf16.mxu0 %v2313_v28  ;;  %2117 = vmatprep.subr.bf16.mxu1 %v2313_v28 }
  0xac   : > { %782 = vmatpush1.bf16.msra.mxu0 %v2315_v29  ;;  %2133 = vmatpush1.bf16.msra.mxu1 %v2315_v29 }
  0xad   : > { %783 = vmatprep.subr.bf16.mxu0 %v2316_v30  ;;  %2118 = vmatprep.subr.bf16.mxu1 %v2316_v30 }
  0xb0   : > { %784 = vmatpush1.bf16.msra.mxu0 %v2318_v31  ;;  %2134 = vmatpush1.bf16.msra.mxu1 %v2318_v31 }
  0xb1   : > { %785 = vmatprep.subr.bf16.mxu0 %v2319_v32  ;;  %2119 = vmatprep.subr.bf16.mxu1 %v2319_v32 }
  0xb4   : > { %786 = vmatpush1.bf16.msra.mxu0 %v2321_v33  ;;  %2135 = vmatpush1.bf16.msra.mxu1 %v2321_v33 }
  0xb7   : > { %788 = vmatmul.mubr.bf16.vlgmr.msra.gmra.mrb[0].mxu0 %v2322_v34  ;;  %868 = vmatmul.mubr.bf16.vlgmr.msra.gmra.mrb[0].mxu1 %v2325_v35 }
  0xb8   : > { %797 = vmatprep.mubr.bf16.mxu0 %v2328_v36  ;;  %877 = vmatprep.mubr.bf16.mxu1 %v2330_v37 }
  0xbf   : > { %798 = vmatmul.mubr.bf16.gmra.mrb[4].mxu0 %v2332_v38  ;;  %878 = vmatmul.mubr.bf16.gmra.mrb[4].mxu1 %v2333_v39 }
  0xc0   : > { %807 = vmatprep.mubr.bf16.mxu0 %v2334_v40  ;;  %887 = vmatprep.mubr.bf16.mxu1 %v2336_v41 }
  0xc7   : > { %808 = vmatmul.mubr.bf16.gmra.mrb[8].mxu0 %v2338_v42  ;;  %888 = vmatmul.mubr.bf16.gmra.mrb[8].mxu1 %v2339_v43 }
  0xc8   : > { %817 = vmatprep.mubr.bf16.mxu0 %v2340_v44  ;;  %897 = vmatprep.mubr.bf16.mxu1 %v2342_v45 }
  0xcf   : > { %818 = vmatmul.mubr.bf16.gmra.mrb[12].mxu0 %v2344_v46  ;;  %898 = vmatmul.mubr.bf16.gmra.mrb[12].mxu1 %v2345_v47 }
  0xd0   : > { %827 = vmatprep.mubr.bf16.mxu0 %v2346_v48  ;;  %907 = vmatprep.mubr.bf16.mxu1 %v2348_v49 }
  0xd7   : > { %828 = vmatmul.mubr.bf16.gmra.mrb[16].mxu0 %v2350_v50  ;;  %908 = vmatmul.mubr.bf16.gmra.mrb[16].mxu1 %v2351_v51 }
  0xd8   : > { %837 = vmatprep.mubr.bf16.mxu0 %v2352_v52  ;;  %917 = vmatprep.mubr.bf16.mxu1 %v2354_v53 }
  0xdf   : > { %838 = vmatmul.mubr.bf16.gmra.mrb[20].mxu0 %v2356_v54  ;;  %918 = vmatmul.mubr.bf16.gmra.mrb[20].mxu1 %v2357_v55 }
  0xe0   : > { %847 = vmatprep.mubr.bf16.mxu0 %v2358_v56  ;;  %927 = vmatprep.mubr.bf16.mxu1 %v2360_v57 }
  0xe7   : > { %848 = vmatmul.mubr.bf16.gmra.mrb[24].mxu0 %v2362_v58  ;;  %928 = vmatmul.mubr.bf16.gmra.mrb[24].mxu1 %v2363_v59 }
  0xe8   : > { %857 = vmatprep.mubr.bf16.mxu0 %v2364_v60  ;;  %937 = vmatprep.mubr.bf16.mxu1 %v2366_v61 }
  0xef   : > { %858 = vmatmul.mubr.bf16.gmra.mrb[28].mxu0 %v2368_v62  ;;  %938 = vmatmul.mubr.bf16.gmra.mrb[28].mxu1 %v2369_v63 }
 0x18a   : > { %v3189_v0 = vpop.f32.mrb[0].mxu0  ;;  %v3191_v1 = vpop.f32.mrb[0].mxu1 }
 0x18b   : > { %v1143_v2 = vmax.f32 %v3189_v0, -30.0  ;;  %v1175_v3 = vmax.f32 %v3191_v1, -30.0  ;;  %v3195_v4 = vpop.f32.mrb[1].mxu0  ;;  %v3197_v5 = vpop.f32.mrb[1].mxu1 }
 0x18c   : > { %v1144_v6 = vmax.f32 %v3195_v4, -30.0  ;;  %v1176_v7 = vmax.f32 %v3197_v5, -30.0  ;;  %v3201_v8 = vpop.f32.mrb[2].mxu0  ;;  %v3203_v9 = vpop.f32.mrb[2].mxu1 }
 0x18d   : > { %v1207_v10 = vsub.f32 0.0, %v1143_v2  ;;  %v1239_v11 = vsub.f32 0.0, %v1175_v3  ;;  %v1145_v12 = vmax.f32 %v3201_v8, -30.0  ;;  %v1177_v13 = vmax.f32 %v3203_v9, -30.0  ;;  %v3207_v14 = vpop.f32.mrb[3].mxu0  ;;  %v3209_v15 = vpop.f32.mrb[3].mxu1 }
 0x18e   : > { %v1208_v16 = vsub.f32 0.0, %v1144_v6  ;;  %v1240_v17 = vsub.f32 0.0, %v1176_v7  ;;  %v1146_v18 = vmax.f32 %v3207_v14, -30.0  ;;  %v1178_v19 = vmax.f32 %v3209_v15, -30.0 }
 0x18f   : > { %v1271_v20 = vmul.f32 1.442695, %v1207_v10  ;;  %v1335_v21 = vmul.f32 1.442695, %v1239_v11  ;;  %v1209_v22 = vsub.f32 0.0, %v1145_v12  ;;  %v1241_v23 = vsub.f32 0.0, %v1177_v13 }
 0x190   : > { %v1273_v24 = vmul.f32 1.442695, %v1208_v16  ;;  %v1337_v25 = vmul.f32 1.442695, %v1240_v17  ;;  %v1210_v26 = vsub.f32 0.0, %v1146_v18  ;;  %v1242_v27 = vsub.f32 0.0, %v1178_v19 }
 0x191   : > { %2370 = vpow2.f32 %v1271_v20  ;;  %v1275_v28 = vmul.f32 1.442695, %v1209_v22  ;;  %v1339_v29 = vmul.f32 1.442695, %v1241_v23 }
 0x192   : > { %2372 = vpow2.f32 %v1335_v21  ;;  %v3213_v30 = vpop.f32.mrb[4].mxu0  ;;  %v3215_v31 = vpop.f32.mrb[4].mxu1  ;;  %v1277_v32 = vmul.f32 1.442695, %v1210_v26  ;;  %v1341_v37 = vmul.f32 1.442695, %v1242_v27 }
 0x193   : > { %2374 = vpow2.f32 %v1273_v24  ;;  %v1147_v33 = vmax.f32 %v3213_v30, -30.0  ;;  %v1179_v34 = vmax.f32 %v3215_v31, -30.0  ;;  %v3219_v35 = vpop.f32.mrb[5].mxu0  ;;  %v3221_v36 = vpop.f32.mrb[5].mxu1 }
 0x194   : > { %2376 = vpow2.f32 %v1337_v25  ;;  %v1148_v38 = vmax.f32 %v3219_v35, -30.0  ;;  %v1180_v39 = vmax.f32 %v3221_v36, -30.0  ;;  %v3225_v40 = vpop.f32.mrb[6].mxu0  ;;  %v3227_v41 = vpop.f32.mrb[6].mxu1 }
 0x195   : > { %2378 = vpow2.f32 %v1275_v28  ;;  %v1211_v42 = vsub.f32 0.0, %v1147_v33  ;;  %v1243_v43 = vsub.f32 0.0, %v1179_v34  ;;  %v1149_v44 = vmax.f32 %v3225_v40, -30.0  ;;  %v3230_v45 = vpop.f32.mrb[7].mxu0  ;;  %v3232_v46 = vpop.f32.mrb[7].mxu1 }
 0x196   : > { %2380 = vpow2.f32 %v1339_v29  ;;  %v1212_v47 = vsub.f32 0.0, %v1148_v38  ;;  %v1244_v48 = vsub.f32 0.0, %v1180_v39  ;;  %v1181_v58 = vmax.f32 %v3227_v41, -30.0 }
 0x197   : > { %2382 = vpow2.f32 %v1277_v32  ;;  %v1279_v49 = vmul.f32 1.442695, %v1211_v42  ;;  %v1343_v50 = vmul.f32 1.442695, %v1243_v43  ;;  %v1213_v51 = vsub.f32 0.0, %v1149_v44 }
 0x198   : > { %2384 = vpow2.f32 %v1341_v37  ;;  %v1281_v52 = vmul.f32 1.442695, %v1212_v47  ;;  %v1345_v53 = vmul.f32 1.442695, %v1244_v48  ;;  %v1150_v63 = vmax.f32 %v3230_v45, -30.0 }
 0x199   : > { %2386 = vpow2.f32 %v1279_v49  ;;  %v1283_v54 = vmul.f32 1.442695, %v1213_v51  ;;  %v1182_v10 = vmax.f32 %v3232_v46, -30.0  ;;  %v1245_v20 = vsub.f32 0.0, %v1181_v58 }
 0x19a   : > { %2388 = vpow2.f32 %v1343_v50  ;;  %v3234_v55 = vpop.f32.mrb[8].mxu0  ;;  %v3236_v56 = vpop.f32.mrb[8].mxu1  ;;  %v1214_v24 = vsub.f32 0.0, %v1150_v63 }
 0x19b   : > { %v2371_v57 = vpop.eup %2370  ;;  %2390 = vpow2.f32 %v1281_v52  ;;  %v3239_v59 = vpop.f32.mrb[9].mxu0  ;;  %v1151_v16 = vmax.f32 %v3234_v55, -30.0  ;;  %v1183_v21 = vmax.f32 %v3236_v56, -30.0  ;;  %v1246_v27 = vsub.f32 0.0, %v1182_v10 }
 0x19c   : > { %v3241_v60 = vpop.f32.mrb[9].mxu1  ;;  %v2373_v61 = vpop.eup %2372  ;;  %v1399_v62 = vadd.f32 1.0, %v2371_v57  ;;  %2392 = vpow2.f32 %v1345_v53  ;;  %v1152_v28 = vmax.f32 %v3239_v59, -30.0  ;;  %v1347_v43 = vmul.f32 1.442695, %v1245_v20 }
 0x19d   : > { %v3244_v2 = vpop.f32.mrb[10].mxu0  ;;  %v3246_v3 = vpop.f32.mrb[10].mxu1  ;;  %v1431_v7 = vadd.f32 1.0, %v2373_v61  ;;  %2394 = vpow2.f32 %v1283_v54  ;;  %v1215_v33 = vsub.f32 0.0, %v1151_v16  ;;  %v1184_v34 = vmax.f32 %v3241_v60, -30.0 }
 0x19e   : > { %v2375_v6 = vpop.eup %2374  ;;  %v3249_v11 = vpop.f32.mrb[11].mxu0  ;;  %2396 = vrcp.f32 %v1399_v62  ;;  %v1247_v44 = vsub.f32 0.0, %v1183_v21  ;;  %v1285_v51 = vmul.f32 1.442695, %v1214_v24  ;;  %v1153_v52 = vmax.f32 %v3244_v2, -30.0 }
 0x19f   : > { %v2377_v12 = vpop.eup %2376  ;;  %v1400_v13 = vadd.f32 1.0, %v2375_v6  ;;  %v3252_v17 = vpop.f32.mrb[11].mxu1  ;;  %2398 = vrcp.f32 %v1431_v7  ;;  %v1349_v61 = vmul.f32 1.442695, %v1246_v27  ;;  %v1216_v62 = vsub.f32 0.0, %v1152_v28 }
 0x1a0   : > { %v2379_v18 = vpop.eup %2378  ;;  %v1432_v19 = vadd.f32 1.0, %v2377_v12  ;;  %v1287_v12 = vmul.f32 1.442695, %v1215_v33  ;;  %v1185_v20 = vmax.f32 %v3246_v3, -30.0  ;;  %v1154_v24 = vmax.f32 %v3249_v11, -30.0 }
 0x1a1   : > { %v2381_v22 = vpop.eup %2380  ;;  %2400 = vrcp.f32 %v1400_v13  ;;  %v1401_v23 = vadd.f32 1.0, %v2379_v18  ;;  %v1248_v13 = vsub.f32 0.0, %v1184_v34  ;;  %v1289_v27 = vmul.f32 1.442695, %v1216_v62 }
 0x1a2   : > { %v2383_v25 = vpop.eup %2382  ;;  %2402 = vrcp.f32 %v1432_v19  ;;  %v1433_v26 = vadd.f32 1.0, %v2381_v22  ;;  %v3257_v37 = vpop.f32.mrb[12].mxu0  ;;  %v1351_v19 = vmul.f32 1.442695, %v1247_v44  ;;  %v1186_v28 = vmax.f32 %v3252_v17, -30.0 }
 0x1a3   : > { %v2385_v29 = vpop.eup %2384  ;;  %2404 = vrcp.f32 %v1401_v23  ;;  %v1402_v32 = vadd.f32 1.0, %v2383_v25  ;;  %v3259_v38 = vpop.f32.mrb[12].mxu1  ;;  %v1217_v23 = vsub.f32 0.0, %v1153_v52  ;;  %v1353_v33 = vmul.f32 1.442695, %v1248_v13 }
 0x1a4   : > { %v2387_v39 = vpop.eup %2386  ;;  %2406 = vrcp.f32 %v1433_v26  ;;  %v1434_v42 = vadd.f32 1.0, %v2385_v29  ;;  %v3261_v47 = vpop.f32.mrb[13].mxu0  ;;  %v1155_v34 = vmax.f32 %v3257_v37, -30.0 }
 0x1a5   : > { %v3263_v48 = vpop.f32.mrb[13].mxu1  ;;  %v2389_v49 = vpop.eup %2388  ;;  %2408 = vrcp.f32 %v1402_v32  ;;  %v1403_v50 = vadd.f32 1.0, %v2387_v39  ;;  %v1291_v62 = vmul.f32 1.442695, %v1217_v23 }
 0x1a6   : > { %v3266_v53 = vpop.f32.mrb[14].mxu0  ;;  %v3268_v54 = vpop.f32.mrb[14].mxu1  ;;  %2410 = vrcp.f32 %v1434_v42  ;;  %v1435_v58 = vadd.f32 1.0, %v2389_v49  ;;  %v1249_v49 = vsub.f32 0.0, %v1185_v20  ;;  %v1219_v23 = vsub.f32 0.0, %v1155_v34 }
 0x1a7   : > { %v2391_v57 = vpop.eup %2390  ;;  %v3270_v63 = vpop.f32.mrb[15].mxu0  ;;  %2412 = vrcp.f32 %v1403_v50  ;;  %v1187_v50 = vmax.f32 %v3259_v38, -30.0 }
 0x1a8   : > { %v3272_v6 = vpop.f32.mrb[15].mxu1  ;;  %v2393_v7 = vpop.eup %2392  ;;  %v1404_v10 = vadd.f32 1.0, %v2391_v57  ;;  %2414 = vrcp.f32 %v1435_v58 }
 0x1a9   : > { %v2395_v16 = vpop.eup %2394  ;;  %v1436_v18 = vadd.f32 1.0, %v2393_v7  ;;  %v1218_v7 = vsub.f32 0.0, %v1154_v24 }
 0x1aa   : > { %v2397_v21 = vpop.eup %2396  ;;  %2416 = vrcp.f32 %v1404_v10  ;;  %v1405_v22 = vadd.f32 1.0, %v2395_v16  ;;  %v3285_v39 = vpop.f32.mrb[16].mxu0 }
 0x1ab   : > { %v2399_v25 = vpop.eup %2398  ;;  %v1527_v26 = vmul.f32 %v2397_v21, %v3189_v0  ;;  %2418 = vrcp.f32 %v1436_v18  ;;  %3642 = vst [vmem:[#allocation18_spill] sm:$0xff] %v3285_v39  ;;  %v3287_v42 = vpop.f32.mrb[16].mxu1  ;;  %v1250_v18 = vsub.f32 0.0, %v1186_v28 }
 0x1ac   : > { %v2401_v29 = vpop.eup %2400  ;;  %v1559_v32 = vmul.f32 %v2399_v25, %v3191_v1  ;;  %2420 = vrcp.f32 %v1405_v22  ;;  %3643 = vst [vmem:[#allocation19_spill] sm:$0xff] %v3287_v42  ;;  %v3291_v52 = vpop.f32.mrb[17].mxu0  ;;  %v1251_v25 = vsub.f32 0.0, %v1187_v50 }
 0x1ad   : > { %v2403_v44 = vpop.eup %2402  ;;  %v1528_v0 = vmul.f32 %v2401_v29, %v3195_v4  ;;  %2422 = vpow2.f32 %v1347_v43  ;;  %v3293_v57 = vpop.f32.mrb[17].mxu1  ;;  %v1357_v34 = vmul.f32 1.442695, %v1250_v18 }
 0x1ae   : > { %v2405_v1 = vpop.eup %2404  ;;  %v1560_v58 = vmul.f32 %v2403_v44, %v3197_v5  ;;  %2424 = vpow2.f32 %v1285_v51  ;;  %v3296_v10 = vpop.f32.mrb[18].mxu0 }
 0x1af   : > { %v3298_v13 = vpop.f32.mrb[18].mxu1  ;;  %v2407_v4 = vpop.eup %2406  ;;  %v2072_v43 = vpack.c.bf16 %v1528_v0, %v1527_v26  ;;  %v1529_v16 = vmul.f32 %v2405_v1, %v3201_v8  ;;  %2426 = vpow2.f32 %v1349_v61  ;;  %v1355_v61 = vmul.f32 1.442695, %v1249_v49 }
 0x1b0   : > { %3644 = vst [vmem:[#allocation20_spill] sm:$0xff] %v3298_v13  ;;  %v3301_v20 = vpop.f32.mrb[19].mxu0  ;;  %v3303_v21 = vpop.f32.mrb[19].mxu1  ;;  %v2088_v5 = vpack.c.bf16 %v1560_v58, %v1559_v32  ;;  %v1561_v51 = vmul.f32 %v2407_v4, %v3203_v9  ;;  %2428 = vpow2.f32 %v1287_v12  ;;  %v1293_v9 = vmul.f32 1.442695, %v1218_v7 }
 0x1b1   : > { %v2409_v22 = vpop.eup %2408  ;;  %1783 = vst [vmem:[%s3307_s12] sm:$0xff] %v2072_v43  ;;  %2430 = vpow2.f32 %v1351_v19  ;;  %v1295_v19 = vmul.f32 1.442695, %v1219_v23  ;;  %v1359_v1 = vmul.f32 1.442695, %v1251_v25  ;;  %v1189_v25 = vmax.f32 %v3268_v54, -30.0 }
 0x1b2   : > { %v2411_v24 = vpop.eup %2410  ;;  %v1530_v8 = vmul.f32 %v2409_v22, %v3207_v14  ;;  %1799 = vst [vmem:[%s3307_s12 + $0x80] sm:$0xff] %v2088_v5  ;;  %2432 = vpow2.f32 %v1289_v27  ;;  %v3315_v49 = vpop.f32.mrb[20].mxu0 }
 0x1b3   : > { %v2413_v26 = vpop.eup %2412  ;;  %v1562_v28 = vmul.f32 %v2411_v24, %v3209_v15  ;;  %2434 = vpow2.f32 %v1353_v33  ;;  %v3317_v50 = vpop.f32.mrb[20].mxu1 }
 0x1b4   : > { %v2415_v12 = vpop.eup %2414  ;;  %v2073_v29 = vpack.c.bf16 %v1530_v8, %v1529_v16  ;;  %v1531_v32 = vmul.f32 %v2413_v26, %v3213_v30  ;;  %2436 = vpow2.f32 %v1291_v62  ;;  %v1156_v30 = vmax.f32 %v3261_v47, -30.0  ;;  %v3322_v33 = vpop.f32.mrb[21].mxu0 }
 0x1b5   : > { %v2417_v44 = vpop.eup %2416  ;;  %v2089_v0 = vpack.c.bf16 %v1562_v28, %v1561_v51  ;;  %v1563_v14 = vmul.f32 %v2415_v12, %v3215_v31  ;;  %2438 = vpow2.f32 %v1355_v61  ;;  %v3324_v58 = vpop.f32.mrb[21].mxu1  ;;  %v1188_v62 = vmax.f32 %v3263_v48, -30.0 }
 0x1b6   : > { %v2419_v15 = vpop.eup %2418  ;;  %1784 = vst [vmem:[%s3307_s12 + $0x8] sm:$0xff] %v2073_v29  ;;  %v1532_v27 = vmul.f32 %v2417_v44, %v3219_v35  ;;  %2440 = vpow2.f32 %v1293_v9  ;;  %v3331_v4 = vpop.f32.mrb[22].mxu0  ;;  %v1220_v61 = vsub.f32 0.0, %v1156_v30 }
 0x1b7   : > { %v3326_v7 = vpop.eup %2420  ;;  %1800 = vst [vmem:[%s3307_s12 + $0x88] sm:$0xff] %v2089_v0  ;;  %v1564_v31 = vmul.f32 %v2419_v15, %v3221_v36  ;;  %v3333_v35 = vpop.f32.mrb[22].mxu1  ;;  %2442 = vpow2.f32 %v1357_v34  ;;  %v1157_v36 = vmax.f32 %v3266_v53, -30.0  ;;  %v1252_v9 = vsub.f32 0.0, %v1188_v62 }
 0x1b8   : > { %v2423_v43 = vpop.eup %2422  ;;  %v2074_v16 = vpack.c.bf16 %v1532_v27, %v1531_v32  ;;  %v3335_v18 = vpop.f32.mrb[23].mxu0  ;;  %2444 = vpow2.f32 %v1295_v19  ;;  %v1158_v32 = vmax.f32 %v3270_v63, -30.0  ;;  %v1297_v30 = vmul.f32 1.442695, %v1220_v61 }
 0x1b9   : > { %v3337_v22 = vpop.f32.mrb[23].mxu1  ;;  %v2425_v5 = vpop.eup %2424  ;;  %v2090_v51 = vpack.c.bf16 %v1564_v31, %v1563_v14  ;;  %v1437_v23 = vadd.f32 1.0, %v2423_v43  ;;  %2446 = vpow2.f32 %v1359_v1  ;;  %v1221_v0 = vsub.f32 0.0, %v1157_v36 }
 0x1ba   : > { %v2427_v24 = vpop.eup %2426  ;;  %1785 = vst [vmem:[%s3307_s12 + $0x10] sm:$0xff] %v2074_v16  ;;  %v1406_v8 = vadd.f32 1.0, %v2425_v5  ;;  %v1190_v14 = vmax.f32 %v3272_v6, -30.0  ;;  %v3345_v19 = vpop.f32.mrb[24].mxu0  ;;  %v1253_v31 = vsub.f32 0.0, %v1189_v25 }
 0x1bb   : > { %v2429_v26 = vpop.eup %2428  ;;  %1801 = vst [vmem:[%s3307_s12 + $0x90] sm:$0xff] %v2090_v51  ;;  %2448 = vrcp.f32 %v1437_v23  ;;  %v1438_v28 = vadd.f32 1.0, %v2427_v24  ;;  %v3347_v15 = vpop.f32.mrb[24].mxu1  ;;  %v1361_v5 = vmul.f32 1.442695, %v1252_v9 }
 0x1bc   : > { %v2431_v12 = vpop.eup %2430  ;;  %2450 = vrcp.f32 %v1406_v8  ;;  %v1407_v29 = vadd.f32 1.0, %v2429_v26  ;;  %v3349_v62 = vpop.f32.mrb[25].mxu0  ;;  %v1222_v8 = vsub.f32 0.0, %v1158_v32  ;;  %v1159_v26 = vmax.f32 %v3285_v39, -30.0 }
 0x1bd   : > { %v2433_v34 = vpop.eup %2432  ;;  %2452 = vrcp.f32 %v1438_v28  ;;  %v1439_v44 = vadd.f32 1.0, %v2431_v12  ;;  %v3351_v51 = vpop.f32.mrb[25].mxu1 }
 0x1be   : > { %v2435_v27 = vpop.eup %2434  ;;  %2454 = vrcp.f32 %v1407_v29  ;;  %v1408_v1 = vadd.f32 1.0, %v2433_v34  ;;  %v3353_v23 = vpop.f32.mrb[26].mxu0  ;;  %v1299_v29 = vmul.f32 1.442695, %v1221_v0  ;;  %v1254_v34 = vsub.f32 0.0, %v1190_v14 }
 0x1bf   : > { %v2437_v43 = vpop.eup %2436  ;;  %2456 = vrcp.f32 %v1439_v44  ;;  %v1440_v16 = vadd.f32 1.0, %v2435_v27  ;;  %3645 = vst [vmem:[#allocation21_spill] sm:$0xff] %v3353_v23  ;;  %v3356_v28 = vpop.f32.mrb[26].mxu1  ;;  %v1363_v23 = vmul.f32 1.442695, %v1253_v31  ;;  %v1192_v31 = vmax.f32 %v3293_v57, -30.0 }
 0x1c0   : > { %v2439_v36 = vpop.eup %2438  ;;  %2458 = vrcp.f32 %v1408_v1  ;;  %v1409_v24 = vadd.f32 1.0, %v2437_v43  ;;  %3646 = vst [vmem:[#allocation22_spill] sm:$0xff] %v3356_v28  ;;  %v3358_v61 = vpop.f32.mrb[27].mxu0  ;;  %v1191_v1 = vmax.f32 %v3287_v42, -30.0  ;;  %v1533_v43 = vmul.f32 %v3326_v7, %v3225_v40 }
 0x1c1   : > { %3647 = vst [vmem:[#allocation23_spill] sm:$0xff] %v3358_v61  ;;  %v2441_v25 = vpop.eup %2440  ;;  %2460 = vrcp.f32 %v1440_v16  ;;  %v1441_v12 = vadd.f32 1.0, %v2439_v36  ;;  %v3360_v9 = vpop.f32.mrb[27].mxu1  ;;  %v1160_v61 = vmax.f32 %v3291_v52, -30.0  ;;  %v1301_v14 = vmul.f32 1.442695, %v1222_v8 }
 0x1c2   : > { %3648 = vst [vmem:[#allocation24_spill] sm:$0xff] %v3360_v9  ;;  %v2443_v44 = vpop.eup %2442  ;;  %2462 = vrcp.f32 %v1409_v24  ;;  %v1410_v27 = vadd.f32 1.0, %v2441_v25  ;;  %v1223_v36 = vsub.f32 0.0, %v1159_v26  ;;  %v1365_v25 = vmul.f32 1.442695, %v1254_v34  ;;  %v3367_v42 = vpop.f32.mrb[28].mxu0 }
 0x1c3   : > { %v2445_v32 = vpop.eup %2444  ;;  %2464 = vrcp.f32 %v1441_v12  ;;  %v1442_v28 = vadd.f32 1.0, %v2443_v44  ;;  %v3369_v39 = vpop.f32.mrb[28].mxu1  ;;  %v1255_v12 = vsub.f32 0.0, %v1191_v1  ;;  %v1161_v44 = vmax.f32 %v3296_v10, -30.0 }
 0x1c4   : > { %v2447_v16 = vpop.eup %2446  ;;  %2466 = vrcp.f32 %v1410_v27  ;;  %v1411_v0 = vadd.f32 1.0, %v2445_v32  ;;  %3649 = vst [vmem:[#allocation25_spill] sm:$0xff] %v3369_v39  ;;  %v3373_v27 = vpop.f32.mrb[29].mxu0  ;;  %v1224_v34 = vsub.f32 0.0, %v1160_v61  ;;  %v1193_v32 = vmax.f32 %v3298_v13, -30.0 }
 0x1c5   : > { %v2449_v9 = vpop.eup %2448  ;;  %2468 = vrcp.f32 %v1442_v28  ;;  %v1443_v24 = vadd.f32 1.0, %v2447_v16  ;;  %3650 = vst [vmem:[#allocation26_spill] sm:$0xff] %v3373_v27  ;;  %v3375_v8 = vpop.f32.mrb[29].mxu1  ;;  %v1303_v1 = vmul.f32 1.442695, %v1223_v36 }
 0x1c6   : > { %v2451_v40 = vpop.eup %2450  ;;  %v1565_v7 = vmul.f32 %v2449_v9, %v3227_v41  ;;  %2470 = vrcp.f32 %v1411_v0  ;;  %3651 = vst [vmem:[#allocation27_spill] sm:$0xff] %v3375_v8  ;;  %v3379_v16 = vpop.f32.mrb[30].mxu0  ;;  %v1162_v0 = vmax.f32 %v3301_v20, -30.0 }
 0x1c7   : > { %v2453_v26 = vpop.eup %2452  ;;  %v1534_v28 = vmul.f32 %v2451_v40, %v3230_v45  ;;  %2472 = vrcp.f32 %v1443_v24  ;;  %3652 = vst [vmem:[#allocation28_spill] sm:$0xff] %v3379_v16  ;;  %v3381_v39 = vpop.f32.mrb[30].mxu1  ;;  %v1256_v40 = vsub.f32 0.0, %v1192_v31 }
 0x1c8   : > { %3653 = vst [vmem:[#allocation29_spill] sm:$0xff] %v3381_v39  ;;  %v2455_v41 = vpop.eup %2454  ;;  %v1566_v9 = vmul.f32 %v2453_v26, %v3232_v46  ;;  %2474 = vpow2.f32 %v1297_v30  ;;  %v3385_v8 = vpop.f32.mrb[31].mxu0  ;;  %v1225_v30 = vsub.f32 0.0, %v1161_v44 }
 0x1c9   : > { %3654 = vst [vmem:[#allocation30_spill] sm:$0xff] %v3385_v8  ;;  %v3387_v27 = vpop.f32.mrb[31].mxu1  ;;  %v2457_v45 = vpop.eup %2456  ;;  %v2075_v61 = vpack.c.bf16 %v1534_v28, %v1533_v43  ;;  %v1535_v24 = vmul.f32 %v2455_v41, %v3234_v55  ;;  %2476 = vpow2.f32 %v1361_v5  ;;  %v1367_v8 = vmul.f32 1.442695, %v1255_v12 }
 0x1ca   : > { %3655 = vst [vmem:[#allocation31_spill] sm:$0xff] %v3387_v27  ;;  %v2459_v39 = vpop.eup %2458  ;;  %v2091_v16 = vpack.c.bf16 %v1566_v9, %v1565_v7  ;;  %v1567_v46 = vmul.f32 %v2457_v45, %v3236_v56  ;;  %2478 = vpow2.f32 %v1299_v29  ;;  %v1257_v27 = vsub.f32 0.0, %v1193_v32 }
 0x1cb   : > { %v2461_v36 = vpop.eup %2460  ;;  %1786 = vst [vmem:[%s3307_s12 + $0x18] sm:$0xff] %v2075_v61  ;;  %v1536_v26 = vmul.f32 %v2459_v39, %v3239_v59  ;;  %2480 = vpow2.f32 %v1363_v23  ;;  %v1305_v5 = vmul.f32 1.442695, %v1224_v34  ;;  %v1226_v43 = vsub.f32 0.0, %v1162_v0 }
 0x1cc   : > { %v2463_v13 = vpop.eup %2462  ;;  %1802 = vst [vmem:[%s3307_s12 + $0x98] sm:$0xff] %v2091_v16  ;;  %v1568_v55 = vmul.f32 %v2461_v36, %v3241_v60  ;;  %2482 = vpow2.f32 %v1301_v14  ;;  %v1369_v7 = vmul.f32 1.442695, %v1256_v40  ;;  %v1307_v23 = vmul.f32 1.442695, %v1225_v30 }
 0x1cd   : > { %v2465_v31 = vpop.eup %2464  ;;  %v2076_v56 = vpack.c.bf16 %v1536_v26, %v1535_v24  ;;  %v1537_v29 = vmul.f32 %v2463_v13, %v3244_v2  ;;  %2484 = vpow2.f32 %v1365_v25  ;;  %v1371_v14 = vmul.f32 1.442695, %v1257_v27 }
 0x1ce   : > { %v2467_v44 = vpop.eup %2466  ;;  %v2092_v59 = vpack.c.bf16 %v1568_v55, %v1567_v46  ;;  %v1569_v39 = vmul.f32 %v2465_v31, %v3246_v3  ;;  %2486 = vpow2.f32 %v1303_v1  ;;  %v1309_v13 = vmul.f32 1.442695, %v1226_v43 }
 0x1cf   : > { %v2469_v12 = vpop.eup %2468  ;;  %1787 = vst [vmem:[%s3307_s12 + $0x20] sm:$0xff] %v2076_v56  ;;  %v1538_v60 = vmul.f32 %v2467_v44, %v3249_v11  ;;  %2488 = vpow2.f32 %v1367_v8  ;;  %v1194_v34 = vmax.f32 %v3303_v21, -30.0  ;;  %v1163_v32 = vmax.f32 %v3315_v49, -30.0 }
 0x1d0   : > { %v3399_v28 = vpop.eup %2470  ;;  %1803 = vst [vmem:[%s3307_s12 + $0xa0] sm:$0xff] %v2092_v59  ;;  %v1570_v2 = vmul.f32 %v2469_v12, %v3252_v17  ;;  %2490 = vpow2.f32 %v1305_v5  ;;  %v1195_v27 = vmax.f32 %v3317_v50, -30.0  ;;  %v1164_v17 = vmax.f32 %v3322_v33, -30.0 }
 0x1d1   : > { %v3403_v25 = vpop.eup %2472  ;;  %v2077_v3 = vpack.c.bf16 %v1538_v60, %v1537_v29  ;;  %2492 = vpow2.f32 %v1369_v7  ;;  %v1196_v0 = vmax.f32 %v3324_v58, -30.0  ;;  %v1258_v24 = vsub.f32 0.0, %v1194_v34 }
 0x1d2   : > { %v2475_v11 = vpop.eup %2474  ;;  %v2093_v8 = vpack.c.bf16 %v1570_v2, %v1569_v39  ;;  %2494 = vpow2.f32 %v1307_v23  ;;  %v1227_v40 = vsub.f32 0.0, %v1163_v32  ;;  %v1259_v36 = vsub.f32 0.0, %v1195_v27 }
 0x1d3   : > { %v2477_v16 = vpop.eup %2476  ;;  %1788 = vst [vmem:[%s3307_s12 + $0x28] sm:$0xff] %v2077_v3  ;;  %v1412_v41 = vadd.f32 1.0, %v2475_v11  ;;  %2496 = vpow2.f32 %v1371_v14  ;;  %v1165_v26 = vmax.f32 %v3331_v4, -30.0  ;;  %v1228_v43 = vsub.f32 0.0, %v1164_v17 }
 0x1d4   : > { %v2479_v9 = vpop.eup %2478  ;;  %1804 = vst [vmem:[%s3307_s12 + $0xa8] sm:$0xff] %v2093_v8  ;;  %v1444_v1 = vadd.f32 1.0, %v2477_v16  ;;  %2498 = vpow2.f32 %v1309_v13  ;;  %v1197_v31 = vmax.f32 %v3333_v35, -30.0  ;;  %v1260_v7 = vsub.f32 0.0, %v1196_v0 }
 0x1d5   : > { %v2481_v45 = vpop.eup %2480  ;;  %2500 = vrcp.f32 %v1412_v41  ;;  %v1413_v61 = vadd.f32 1.0, %v2479_v9  ;;  %v1373_v39 = vmul.f32 1.442695, %v1258_v24  ;;  %v1311_v23 = vmul.f32 1.442695, %v1227_v40 }
 0x1d6   : > { %v2483_v46 = vpop.eup %2482  ;;  %2502 = vrcp.f32 %v1444_v1  ;;  %v1445_v30 = vadd.f32 1.0, %v2481_v45  ;;  %v1375_v14 = vmul.f32 1.442695, %v1259_v36  ;;  %v1229_v2 = vsub.f32 0.0, %v1165_v26 }
 0x1d7   : > { %v2485_v55 = vpop.eup %2484  ;;  %2504 = vrcp.f32 %v1413_v61  ;;  %v1414_v5 = vadd.f32 1.0, %v2483_v46  ;;  %v1313_v34 = vmul.f32 1.442695, %v1228_v43  ;;  %v1261_v32 = vsub.f32 0.0, %v1197_v31 }
 0x1d8   : > { %v2487_v56 = vpop.eup %2486  ;;  %2506 = vrcp.f32 %v1445_v30  ;;  %v1446_v29 = vadd.f32 1.0, %v2485_v55  ;;  %v1377_v27 = vmul.f32 1.442695, %v1260_v7  ;;  %v1166_v16 = vmax.f32 %v3335_v18, -30.0 }
 0x1d9   : > { %v2489_v44 = vpop.eup %2488  ;;  %2508 = vrcp.f32 %v1414_v5  ;;  %v1415_v59 = vadd.f32 1.0, %v2487_v56  ;;  %v1539_v17 = vmul.f32 %v3399_v28, %v3257_v37  ;;  %v1198_v1 = vmax.f32 %v3337_v22, -30.0 }
 0x1da   : > { %v2491_v12 = vpop.eup %2490  ;;  %2510 = vrcp.f32 %v1446_v29  ;;  %v1447_v60 = vadd.f32 1.0, %v2489_v44  ;;  %v1571_v45 = vmul.f32 %v3403_v25, %v3259_v38  ;;  %v1315_v24 = vmul.f32 1.442695, %v1229_v2 }
 0x1db   : > { %v2493_v13 = vpop.eup %2492  ;;  %2512 = vrcp.f32 %v1415_v59  ;;  %v1416_v3 = vadd.f32 1.0, %v2491_v12  ;;  %v1379_v30 = vmul.f32 1.442695, %v1261_v32  ;;  %v1167_v36 = vmax.f32 %v3345_v19, -30.0 }
 0x1dc   : > { %v2495_v11 = vpop.eup %2494  ;;  %2514 = vrcp.f32 %v1447_v60  ;;  %v1448_v8 = vadd.f32 1.0, %v2493_v13  ;;  %v1230_v28 = vsub.f32 0.0, %v1166_v16  ;;  %v1199_v55 = vmax.f32 %v3347_v15, -30.0 }
 0x1dd   : > { %v2497_v41 = vpop.eup %2496  ;;  %2516 = vrcp.f32 %v1416_v3  ;;  %v1417_v9 = vadd.f32 1.0, %v2495_v11  ;;  %v1262_v25 = vsub.f32 0.0, %v1198_v1  ;;  %v1168_v43 = vmax.f32 %v3349_v62, -30.0 }
 0x1de   : > { %v2499_v0 = vpop.eup %2498  ;;  %2518 = vrcp.f32 %v1448_v8  ;;  %v1449_v61 = vadd.f32 1.0, %v2497_v41  ;;  %v1231_v12 = vsub.f32 0.0, %v1167_v36  ;;  %v1317_v2 = vmul.f32 1.442695, %v1230_v28  ;;  %v3659_v28 = vld [vmem:[#allocation22_spill] sm:$0xff] }
 0x1df   : > { %v2501_v40 = vpop.eup %2500  ;;  %2520 = vrcp.f32 %v1417_v9  ;;  %v1418_v46 = vadd.f32 1.0, %v2499_v0  ;;  %v1263_v13 = vsub.f32 0.0, %v1199_v55  ;;  %v1232_v32 = vsub.f32 0.0, %v1168_v43 }
 0x1e0   : > { %v2503_v26 = vpop.eup %2502  ;;  %v1540_v37 = vmul.f32 %v2501_v40, %v3261_v47  ;;  %2522 = vrcp.f32 %v1449_v61  ;;  %v1200_v47 = vmax.f32 %v3351_v51, -30.0  ;;  %v1319_v9 = vmul.f32 1.442695, %v1231_v12 }
 0x1e1   : > { %v2505_v5 = vpop.eup %2504  ;;  %v1572_v38 = vmul.f32 %v2503_v26, %v3263_v48  ;;  %2524 = vrcp.f32 %v1418_v46  ;;  %v1201_v55 = vmax.f32 %v3659_v28, -30.0 }
 0x1e2   : > { %v2507_v31 = vpop.eup %2506  ;;  %v2078_v56 = vpack.c.bf16 %v1540_v37, %v1539_v17  ;;  %v1541_v29 = vmul.f32 %v2505_v5, %v3266_v53  ;;  %2526 = vpow2.f32 %v1373_v39  ;;  %v1381_v39 = vmul.f32 1.442695, %v1262_v25  ;;  %v3658_v37 = vld [vmem:[#allocation21_spill] sm:$0xff] }
 0x1e3   : > { %v2509_v7 = vpop.eup %2508  ;;  %v2094_v44 = vpack.c.bf16 %v1572_v38, %v1571_v45  ;;  %v1573_v59 = vmul.f32 %v2507_v31, %v3268_v54  ;;  %2528 = vpow2.f32 %v1311_v23  ;;  %v3656_v23 = vld [vmem:[#allocation18_spill] sm:$0xff]  ;;  %v1264_v16 = vsub.f32 0.0, %v1200_v47 }
 0x1e4   : > { %v2511_v60 = vpop.eup %2510  ;;  %1789 = vst [vmem:[%s3307_s12 + $0x30] sm:$0xff] %v2078_v56  ;;  %v1542_v48 = vmul.f32 %v2509_v7, %v3270_v63  ;;  %2530 = vpow2.f32 %v1375_v14  ;;  %v3657_v14 = vld [vmem:[#allocation19_spill] sm:$0xff] }
 0x1e5   : > { %v2513_v3 = vpop.eup %2512  ;;  %1805 = vst [vmem:[%s3307_s12 + $0xb0] sm:$0xff] %v2094_v44  ;;  %v1574_v53 = vmul.f32 %v2511_v60, %v3272_v6  ;;  %2532 = vpow2.f32 %v1313_v34  ;;  %v1383_v34 = vmul.f32 1.442695, %v1263_v13  ;;  %v1385_v46 = vmul.f32 1.442695, %v1264_v16 }
 0x1e6   : > { %v2515_v11 = vpop.eup %2514  ;;  %v2079_v54 = vpack.c.bf16 %v1542_v48, %v1541_v29  ;;  %v1543_v8 = vmul.f32 %v2513_v3, %v3656_v23  ;;  %2534 = vpow2.f32 %v1377_v27  ;;  %v1321_v27 = vmul.f32 1.442695, %v1232_v32  ;;  %v3661_v29 = vld [vmem:[#allocation24_spill] sm:$0xff] }
 0x1e7   : > { %v2517_v41 = vpop.eup %2516  ;;  %v2095_v63 = vpack.c.bf16 %v1574_v53, %v1573_v59  ;;  %v1575_v17 = vmul.f32 %v2515_v11, %v3657_v14  ;;  %2536 = vpow2.f32 %v1315_v24  ;;  %v1202_v47 = vmax.f32 %v3661_v29, -30.0 }
 0x1e8   : > { %v2519_v1 = vpop.eup %2518  ;;  %1790 = vst [vmem:[%s3307_s12 + $0x38] sm:$0xff] %v2079_v54  ;;  %v1544_v6 = vmul.f32 %v2517_v41, %v3291_v52  ;;  %2538 = vpow2.f32 %v1379_v30  ;;  %v1171_v44 = vmax.f32 %v3367_v42, -30.0  ;;  %v1265_v48 = vsub.f32 0.0, %v1201_v55  ;;  %v3665_v55 = vld [vmem:[#allocation20_spill] sm:$0xff] }
 0x1e9   : > { %v2521_v0 = vpop.eup %2520  ;;  %1806 = vst [vmem:[%s3307_s12 + $0xb8] sm:$0xff] %v2095_v63  ;;  %v1576_v45 = vmul.f32 %v2519_v1, %v3293_v57  ;;  %2540 = vpow2.f32 %v1317_v2  ;;  %v1169_v57 = vmax.f32 %v3658_v37, -30.0  ;;  %v1266_v32 = vsub.f32 0.0, %v1202_v47 }
 0x1ea   : > { %v3438_v61 = vpop.eup %2522  ;;  %v2080_v40 = vpack.c.bf16 %v1544_v6, %v1543_v8  ;;  %v1545_v24 = vmul.f32 %v2521_v0, %v3296_v10  ;;  %2542 = vpow2.f32 %v1381_v39  ;;  %v3660_v10 = vld [vmem:[#allocation23_spill] sm:$0xff]  ;;  %v1235_v23 = vsub.f32 0.0, %v1171_v44  ;;  %v3662_v8 = vld [vmem:[#allocation25_spill] sm:$0xff] }
 0x1eb   : > { %v2525_v36 = vpop.eup %2524  ;;  %v2096_v26 = vpack.c.bf16 %v1576_v45, %v1575_v17  ;;  %2544 = vpow2.f32 %v1319_v9  ;;  %v1170_v25 = vmax.f32 %v3660_v10, -30.0  ;;  %v1233_v60 = vsub.f32 0.0, %v1169_v57 }
 0x1ec   : > { %v2527_v52 = vpop.eup %2526  ;;  %1791 = vst [vmem:[%s3307_s12 + $0x40] sm:$0xff] %v2080_v40  ;;  %v1546_v30 = vmul.f32 %v2525_v36, %v3301_v20  ;;  %2546 = vpow2.f32 %v1383_v34  ;;  %v1203_v16 = vmax.f32 %v3662_v8, -30.0  ;;  %v1387_v17 = vmul.f32 1.442695, %v1265_v48  ;;  %v3663_v34 = vld [vmem:[#allocation26_spill] sm:$0xff] }
 0x1ed   : > { %v2529_v5 = vpop.eup %2528  ;;  %1807 = vst [vmem:[%s3307_s12 + $0xc0] sm:$0xff] %v2096_v26  ;;  %v1450_v38 = vadd.f32 1.0, %v2527_v52  ;;  %2548 = vpow2.f32 %v1321_v27  ;;  %v1234_v3 = vsub.f32 0.0, %v1170_v25  ;;  %v1323_v14 = vmul.f32 1.442695, %v1233_v60  ;;  %v3666_v25 = vld [vmem:[#allocation28_spill] sm:$0xff] }
 0x1ee   : > { %v2531_v43 = vpop.eup %2530  ;;  %v2081_v31 = vpack.c.bf16 %v1546_v30, %v1545_v24  ;;  %v1419_v56 = vadd.f32 1.0, %v2529_v5  ;;  %2550 = vpow2.f32 %v1385_v46  ;;  %v1172_v0 = vmax.f32 %v3663_v34, -30.0  ;;  %v3664_v24 = vld [vmem:[#allocation27_spill] sm:$0xff]  ;;  %v3668_v60 = vld [vmem:[#allocation30_spill] sm:$0xff] }
 0x1ef   : > { %v2533_v7 = vpop.eup %2532  ;;  %2552 = vrcp.f32 %v1450_v38  ;;  %v1451_v20 = vadd.f32 1.0, %v2531_v43  ;;  %v1325_v6 = vmul.f32 1.442695, %v1234_v3  ;;  %v1389_v40 = vmul.f32 1.442695, %v1266_v32  ;;  %v3669_v3 = vld [vmem:[#allocation31_spill] sm:$0xff] }
 0x1f0   : > { %v2535_v59 = vpop.eup %2534  ;;  %1792 = vst [vmem:[%s3307_s12 + $0x48] sm:$0xff] %v2081_v31  ;;  %2554 = vrcp.f32 %v1419_v56  ;;  %v1420_v12 = vadd.f32 1.0, %v2533_v7  ;;  %v1204_v46 = vmax.f32 %v3664_v24, -30.0  ;;  %v1327_v52 = vmul.f32 1.442695, %v1235_v23  ;;  %v3667_v7 = vld [vmem:[#allocation29_spill] sm:$0xff] }
 0x1f1   : > { %v2537_v2 = vpop.eup %2536  ;;  %2556 = vrcp.f32 %v1451_v20  ;;  %v1452_v13 = vadd.f32 1.0, %v2535_v59  ;;  %v1267_v30 = vsub.f32 0.0, %v1203_v16  ;;  %v1577_v5 = vmul.f32 %v3438_v61, %v3665_v55 }
 0x1f2   : > { %v2539_v53 = vpop.eup %2538  ;;  %2558 = vrcp.f32 %v1420_v12  ;;  %v1421_v39 = vadd.f32 1.0, %v2537_v2  ;;  %v1173_v43 = vmax.f32 %v3666_v25, -30.0  ;;  %v1236_v47 = vsub.f32 0.0, %v1172_v0 }
 0x1f3   : > { %v2541_v11 = vpop.eup %2540  ;;  %2560 = vrcp.f32 %v1452_v13  ;;  %v1453_v54 = vadd.f32 1.0, %v2539_v53  ;;  %v1205_v20 = vmax.f32 %v3667_v7, -30.0  ;;  %v1268_v12 = vsub.f32 0.0, %v1204_v46 }
 0x1f4   : > { %v2543_v41 = vpop.eup %2542  ;;  %2562 = vrcp.f32 %v1421_v39  ;;  %v1422_v63 = vadd.f32 1.0, %v2541_v11  ;;  %v1174_v48 = vmax.f32 %v3668_v60, -30.0  ;;  %v1391_v13 = vmul.f32 1.442695, %v1267_v30 }
 0x1f5   : > { %v2545_v9 = vpop.eup %2544  ;;  %2564 = vrcp.f32 %v1453_v54  ;;  %v1454_v1 = vadd.f32 1.0, %v2543_v41  ;;  %v1206_v53 = vmax.f32 %v3669_v3, -30.0  ;;  %v1237_v54 = vsub.f32 0.0, %v1173_v43 }
 0x1f6   : > { %v2547_v45 = vpop.eup %2546  ;;  %2566 = vrcp.f32 %v1422_v63  ;;  %v1423_v27 = vadd.f32 1.0, %v2545_v9  ;;  %v1329_v16 = vmul.f32 1.442695, %v1236_v47  ;;  %v1269_v41 = vsub.f32 0.0, %v1205_v20 }
 0x1f7   : > { %v2549_v36 = vpop.eup %2548  ;;  %2568 = vrcp.f32 %v1454_v1  ;;  %v1455_v26 = vadd.f32 1.0, %v2547_v45  ;;  %v1393_v9 = vmul.f32 1.442695, %v1268_v12  ;;  %v1238_v1 = vsub.f32 0.0, %v1174_v48 }
 0x1f8   : > { %v2551_v57 = vpop.eup %2550  ;;  %2570 = vrcp.f32 %v1423_v27  ;;  %v1424_v38 = vadd.f32 1.0, %v2549_v36  ;;  %v1331_v46 = vmul.f32 1.442695, %v1237_v54 }
 0x1f9   : > { %v2553_v31 = vpop.eup %2552  ;;  %2572 = vrcp.f32 %v1455_v26  ;;  %v1456_v56 = vadd.f32 1.0, %v2551_v57 }
 0x1fa   : > { %v2555_v44 = vpop.eup %2554  ;;  %v1578_v59 = vmul.f32 %v2553_v31, %v3303_v21  ;;  %2574 = vrcp.f32 %v1424_v38 }
 0x1fb   : > { %v2557_v2 = vpop.eup %2556  ;;  %v1547_v61 = vmul.f32 %v2555_v44, %v3315_v49  ;;  %2576 = vrcp.f32 %v1456_v56 }
 0x1fc   : > { %v2559_v39 = vpop.eup %2558  ;;  %v2097_v32 = vpack.c.bf16 %v1578_v59, %v1577_v5  ;;  %v1579_v11 = vmul.f32 %v2557_v2, %v3317_v50  ;;  %2578 = vpow2.f32 %v1323_v14  ;;  %v1270_v14 = vsub.f32 0.0, %v1206_v53 }
 0x1fd   : > { %v2561_v23 = vpop.eup %2560  ;;  %v1548_v21 = vmul.f32 %v2559_v39, %v3322_v33  ;;  %2580 = vpow2.f32 %v1387_v17 }
 0x1fe   : > { %v2563_v63 = vpop.eup %2562  ;;  %1808 = vst [vmem:[%s3307_s12 + $0xc8] sm:$0xff] %v2097_v32  ;;  %v1580_v49 = vmul.f32 %v2561_v23, %v3324_v58  ;;  %2582 = vpow2.f32 %v1325_v6  ;;  %v1395_v6 = vmul.f32 1.442695, %v1269_v41 }
 0x1ff   : > { %v2565_v0 = vpop.eup %2564  ;;  %v2082_v45 = vpack.c.bf16 %v1548_v21, %v1547_v61  ;;  %v1549_v50 = vmul.f32 %v2563_v63, %v3331_v4  ;;  %2584 = vpow2.f32 %v1389_v40  ;;  %v1333_v4 = vmul.f32 1.442695, %v1238_v1 }
 0x200   : > { %v2567_v27 = vpop.eup %2566  ;;  %v2098_v33 = vpack.c.bf16 %v1580_v49, %v1579_v11  ;;  %v1581_v17 = vmul.f32 %v2565_v0, %v3333_v35  ;;  %2586 = vpow2.f32 %v1327_v52  ;;  %v1397_v52 = vmul.f32 1.442695, %v1270_v14 }
 0x201   : > { %v2569_v36 = vpop.eup %2568  ;;  %1793 = vst [vmem:[%s3307_s12 + $0x50] sm:$0xff] %v2082_v45  ;;  %v1550_v58 = vmul.f32 %v2567_v27, %v3335_v18  ;;  %2588 = vpow2.f32 %v1391_v13 }
 0x202   : > { %v2571_v26 = vpop.eup %2570  ;;  %1809 = vst [vmem:[%s3307_s12 + $0xd0] sm:$0xff] %v2098_v33  ;;  %v1582_v30 = vmul.f32 %v2569_v36, %v3337_v22  ;;  %2590 = vpow2.f32 %v1329_v16 }
 0x203   : > { %v2573_v40 = vpop.eup %2572  ;;  %v2083_v57 = vpack.c.bf16 %v1550_v58, %v1549_v50  ;;  %v1551_v35 = vmul.f32 %v2571_v26, %v3345_v19  ;;  %2592 = vpow2.f32 %v1393_v9 }
 0x204   : > { %v2575_v55 = vpop.eup %2574  ;;  %v2099_v5 = vpack.c.bf16 %v1582_v30, %v1581_v17  ;;  %v1583_v18 = vmul.f32 %v2573_v40, %v3347_v15  ;;  %2594 = vpow2.f32 %v1331_v46 }
 0x205   : > { %v2577_v38 = vpop.eup %2576  ;;  %1794 = vst [vmem:[%s3307_s12 + $0x58] sm:$0xff] %v2083_v57  ;;  %v1552_v43 = vmul.f32 %v2575_v55, %v3349_v62  ;;  %2596 = vpow2.f32 %v1395_v6 }
 0x206   : > { %v2579_v22 = vpop.eup %2578  ;;  %1810 = vst [vmem:[%s3307_s12 + $0xd8] sm:$0xff] %v2099_v5  ;;  %v1584_v31 = vmul.f32 %v2577_v38, %v3351_v51  ;;  %2598 = vpow2.f32 %v1333_v4 }
 0x207   : > { %v2581_v19 = vpop.eup %2580  ;;  %v2084_v56 = vpack.c.bf16 %v1552_v43, %v1551_v35  ;;  %v1425_v47 = vadd.f32 1.0, %v2579_v22  ;;  %2600 = vpow2.f32 %v1397_v52 }
 0x208   : > { %v2583_v20 = vpop.eup %2582  ;;  %v2100_v44 = vpack.c.bf16 %v1584_v31, %v1583_v18  ;;  %v1457_v15 = vadd.f32 1.0, %v2581_v19 }
 0x209   : > { %v2585_v59 = vpop.eup %2584  ;;  %1795 = vst [vmem:[%s3307_s12 + $0x60] sm:$0xff] %v2084_v56  ;;  %2602 = vrcp.f32 %v1425_v47  ;;  %v1426_v12 = vadd.f32 1.0, %v2583_v20 }
 0x20a   : > { %v2587_v48 = vpop.eup %2586  ;;  %1811 = vst [vmem:[%s3307_s12 + $0xe0] sm:$0xff] %v2100_v44  ;;  %2604 = vrcp.f32 %v1457_v15  ;;  %v1458_v62 = vadd.f32 1.0, %v2585_v59 }
 0x20b   : > { %v2589_v2 = vpop.eup %2588  ;;  %2606 = vrcp.f32 %v1426_v12  ;;  %v1427_v61 = vadd.f32 1.0, %v2587_v48 }
 0x20c   : > { %v2591_v51 = vpop.eup %2590  ;;  %2608 = vrcp.f32 %v1458_v62  ;;  %v1459_v13 = vadd.f32 1.0, %v2589_v2 }
 0x20d   : > { %v2593_v53 = vpop.eup %2592  ;;  %2610 = vrcp.f32 %v1427_v61  ;;  %v1428_v39 = vadd.f32 1.0, %v2591_v51 }
 0x20e   : > { %v2595_v32 = vpop.eup %2594  ;;  %2612 = vrcp.f32 %v1459_v13  ;;  %v1460_v11 = vadd.f32 1.0, %v2593_v53 }
 0x20f   : > { %v2597_v54 = vpop.eup %2596  ;;  %2614 = vrcp.f32 %v1428_v39  ;;  %v1429_v23 = vadd.f32 1.0, %v2595_v32 }
 0x210   : > { %v2599_v21 = vpop.eup %2598  ;;  %2616 = vrcp.f32 %v1460_v11  ;;  %v1461_v16 = vadd.f32 1.0, %v2597_v54 }
 0x211   : > { %v2601_v41 = vpop.eup %2600  ;;  %2618 = vrcp.f32 %v1429_v23  ;;  %v1430_v63 = vadd.f32 1.0, %v2599_v21 }
 0x212   : > { %2620 = vrcp.f32 %v1461_v16  ;;  %v1462_v49 = vadd.f32 1.0, %v2601_v41 }
 0x213   : > { %v2603_v9 = vpop.eup %2602  ;;  %2622 = vrcp.f32 %v1430_v63 }
 0x214   : > { %v2605_v1 = vpop.eup %2604  ;;  %v1553_v0 = vmul.f32 %v2603_v9, %v3658_v37  ;;  %2624 = vrcp.f32 %v1462_v49 }
 0x215   : > { %v2607_v45 = vpop.eup %2606  ;;  %v1585_v50 = vmul.f32 %v2605_v1, %v3659_v28 }
 0x216   : > { %v2609_v14 = vpop.eup %2608  ;;  %v1554_v27 = vmul.f32 %v2607_v45, %v3660_v10 }
 0x217   : > { %v2611_v33 = vpop.eup %2610  ;;  %v1586_v17 = vmul.f32 %v2609_v14, %v3661_v29 }
 0x218   : > { %v2613_v46 = vpop.eup %2612  ;;  %v2085_v36 = vpack.c.bf16 %v1554_v27, %v1553_v0  ;;  %v1555_v58 = vmul.f32 %v2611_v33, %v3367_v42 }
 0x219   : > { %v2615_v37 = vpop.eup %2614  ;;  %v2101_v6 = vpack.c.bf16 %v1586_v17, %v1585_v50  ;;  %v1587_v26 = vmul.f32 %v2613_v46, %v3662_v8 }
 0x21a   : > { %v2617_v30 = vpop.eup %2616  ;;  %1796 = vst [vmem:[%s3307_s12 + $0x68] sm:$0xff] %v2085_v36  ;;  %v1556_v28 = vmul.f32 %v2615_v37, %v3663_v34 }
 0x21b   : > { %v2619_v10 = vpop.eup %2618  ;;  %1812 = vst [vmem:[%s3307_s12 + $0xe8] sm:$0xff] %v2101_v6  ;;  %v1588_v29 = vmul.f32 %v2617_v30, %v3664_v24 }
 0x21c   : > { %v2621_v4 = vpop.eup %2620  ;;  %v2086_v40 = vpack.c.bf16 %v1556_v28, %v1555_v58  ;;  %v1557_v42 = vmul.f32 %v2619_v10, %v3666_v25 }
 0x21d   : > { %v2623_v8 = vpop.eup %2622  ;;  %v2102_v57 = vpack.c.bf16 %v1588_v29, %v1587_v26  ;;  %v1589_v35 = vmul.f32 %v2621_v4, %v3667_v7 }
 0x21e   : > { %v2625_v34 = vpop.eup %2624  ;;  %1797 = vst [vmem:[%s3307_s12 + $0x70] sm:$0xff] %v2086_v40  ;;  %v1558_v52 = vmul.f32 %v2623_v8, %v3668_v60 }
 0x21f   : > { %1813 = vst [vmem:[%s3307_s12 + $0xf0] sm:$0xff] %v2102_v57  ;;  %v1590_v24 = vmul.f32 %v2625_v34, %v3669_v3 }
 0x220   : > { %v2087_v25 = vpack.c.bf16 %v1558_v52, %v1557_v42 }
 0x221   : > { %v2103_v7 = vpack.c.bf16 %v1590_v24, %v1589_v35 }
 0x222   : > { %1798 = vst [vmem:[%s3307_s12 + $0x78] sm:$0xff] %v2087_v25 }
 0x223   : > { %1814 = vst [vmem:[%s3307_s12 + $0xf8] sm:$0xff] %v2103_v7 }
 0x224   : > { %2699 = shalt.err (!%p2696_p11)
}
 0x225   : > { %s2700_s28 = scalar_lea.hbm %s3503_s23, 4096  ;;  %s2704_s26 = scalar_lea.hbm %s3672_s8, 49152 }
 0x226   : > { %p2701_p2 = scmp.ne.s32.totalorder %s3503_s23, %s2700_s28  ;;  %p2705_p7 = scmp.lt.u32.totalorder %s3503_s23, %s3672_s8 }
 0x227   : > { %p2706_p13 = scmp.lt.u32.totalorder %s2704_s26, %s2700_s28  ;;  %p2708_p1 = scmp.lt.u32.totalorder %s2700_s28, %s3503_s23 }
 0x228   : > { %p2702_p5 = pnand %p2701_p2, %p3673_p12 }
 0x229   : > { %p2707_p6 = por %p2706_p13, %p2705_p7 }
 0x22a   : > { %p2703_p3 = pneg %p2702_p5 }
 0x22b   : > { %p2709_p9 = por %p2708_p1, %p2707_p6 }
 0x22d   : > { %p2710_p0 = pnand %p2709_p9, %p2703_p3 }
 0x22f   : > { %2713 = shalt.err (!%p2710_p0)
}
 0x230   : > { %s2844_s24 = smov 128   ;;  %s2845_s4 = smov 384  }
 0x231   : > { %s2846_s15 = smov 8  }
 0x232   : > { %2141 = dma.vmem_to_hbm [thread:$0]  (%p3673_p12), %s3498_s29, 4096, %s3503_s23, %s3509_s5, %s2844_s24, %s2845_s4, %s2846_s15  }
 0x233 PF: > { %p2155_p4 = scmp.ge.s32.totalorder %s2836_s22, 2  ;;  %s1847_s25 = sand.u32 1, %s2784_s9  }
 0x234   : > { %p3674_p10 = scmp.ne.s32.totalorder %s3635_s27, 0  ;;  %s1848_s2 = scalar_lea.sflag [#allocation5], %s1847_s25 }
 0x236   : > { %p2151_p8 = pnand %p2155_p4, %p3674_p10 }
 0x238   : > { %2779 = dma.done.wait (!%p2151_p8), %s1848_s2, 4096  }
 0x239   : > { %2781 = vsyncadd (!%p2151_p8), %s1848_s2, 4294963200  ;;  %s21_s22 = sadd.s32 1, %s2836_s22   ;;  %s3676_s29 = sld [smem:[#allocation16_spill]] }
 0x23a   : > { %p3538_p11 = scmp.ge.s32.totalorder %s21_s22, 14   ;;  %s3677_s19 = sld [smem:[#allocation13_spill]] }
 0x23b   : > { %s3678_s27 = sld [smem:[#allocation14_spill]]  ;;  %s3679_s21 = sld [smem:[#allocation15_spill]] }
 0x23c   : > { %s3680_s9 = smov %s2788_s10  ;;  %s3681_s10 = smov %s2792_s11 }
 0x23d   : > { %s3682_s11 = smov %s3056_s30  ;;  %s3683_s12 = smov %s2800_s13 }
 0x23e   : > { %s3684_s13 = smov %s2804_s14  ;;  %s3686_s15 = smov %s2812_s16 }
 0x23f   : > { %s3685_s14 = smov %s3676_s29  ;;  %s3687_s16 = smov %s2816_s17 }
 0x240   : > { %s3688_s17 = smov %s3053_s0  ;;  %s3689_s18 = smov %s2828_s20 }
 0x241   : > { %s3690_s20 = smov %s3678_s27  ;;  %20 = sbr.rel (!%p3538_p11) target bundleno = 15 (0xf), region = 94 }
 0x248   :  { %1853 = vsyncpa [#allocation4], 1 }
 0x249   :  { %1855 = vsyncpa [#allocation4 + $0x1], 1 }
 0x24a   :  { %1856 = vsyncpa [#allocation7], 1 }
 0x24b   :  { %1858 = vsyncpa [#allocation7 + $0x1], 1 }
 0x24c   :  { %1859 = vsyncpa [#allocation5], 1 }
 0x24d   :  { %1861 = vsyncpa [#allocation5 + $0x1], 1 }

</bundles_post_ra>
